<compile_context>
chip_gen: v7x
topology: tpu7x:2x2x1
jax: 0.10.0
libtpu: 0.0.40
codegen_flags: <defaults>
</compile_context>

<pallas_src>
import math
import functools

import jax
import jax.numpy as jnp
from jax.experimental import pallas as pl
from jax.experimental.pallas import tpu as pltpu

LANE = 128
MATMUL_DTYPE = jnp.bfloat16            # MXU inputs; accumulation stays f32.
_VMEM_LIMIT = 32 * 1024 * 1024         # explicit scoped-VMEM limit (>= v5e default).


def _round_up(n, m):
    return ((n + m - 1) // m) * m


def _pad2(a, rows, cols):
    return jnp.pad(a, ((0, rows - a.shape[0]), (0, cols - a.shape[1])))


def _rep_spec(a):
    """Full-array block, same block index for every grid step (weights/biases)."""
    n = a.ndim
    return pl.BlockSpec(a.shape, lambda *_, _n=n: (0,) * _n)


def _cparams():
    return pltpu.CompilerParams(dimension_semantics=("parallel",),
                                vmem_limit_bytes=_VMEM_LIMIT)


# ----------------------------------------------------------------------------
# In-kernel helpers
# ----------------------------------------------------------------------------

def _ln(x, gamma, beta, h_real):
    """LayerNorm over the real (unpadded) channels, two-pass form.

    x: (S, Hp) f32 with padded channels exactly zero; gamma/beta are zero in
    the padded region so the padded output channels stay zero.
    """
    hp = x.shape[-1]
    maskf = (jax.lax.broadcasted_iota(jnp.int32, (1, hp), 1) < h_real).astype(x.dtype)
    inv_n = 1.0 / h_real
    mu = jnp.sum(x, axis=-1, keepdims=True) * inv_n
    d = (x - mu) * maskf
    var = jnp.sum(d * d, axis=-1, keepdims=True) * inv_n
    return d * jax.lax.rsqrt(var + 1e-5) * gamma + beta


def _conv1d_taps(x, w_ref, b_ref, K):
    """Same-length 1-D conv as K accumulated taps (no wide im2col buffer).

    x: (S, Cin_p) f32; w_ref: (K, Cin_p, Cout_p) bf16 ref; b_ref: (1, Cout_p) f32 ref.
    """
    S, cin = x.shape
    pad = K // 2
    xb = x.astype(MATMUL_DTYPE)
    z = jnp.zeros((pad, cin), MATMUL_DTYPE)
    xp = jnp.concatenate([z, xb, z], axis=0)                    # (S + 2*pad, Cin_p)
    acc = jnp.dot(xp[0:S, :], w_ref[0], preferred_element_type=jnp.float32)
    for k in range(1, K):                                       # static unroll (K small)
        acc = acc + jnp.dot(xp[k:k + S, :], w_ref[k],
                            preferred_element_type=jnp.float32)
    return acc + b_ref[...]


# ----------------------------------------------------------------------------
# Fused Pallas kernels
# ----------------------------------------------------------------------------

def _fft_block_kernel(x_ref, wqkv_ref, bqkv_ref, wo_ref, bo_ref, g1_ref, be1_ref,
                      wc1_ref, bc1_ref, wc2_ref, bc2_ref, g2_ref, be2_ref,
                      o_ref, *, heads, hp, h_real, K):
    """One full FFT block (attention sub-layer + conv sub-layer) per batch item."""
    x = x_ref[0]                                                # (S, Hp) f32
    S = x.shape[0]
    scale = 1.0 / math.sqrt(h_real)                             # reference: 1/sqrt(input_size)

    # ---- attention sub-layer -------------------------------------------------
    qkv = jnp.dot(x.astype(MATMUL_DTYPE), wqkv_ref[...],
                  preferred_element_type=jnp.float32) + bqkv_ref[...]
    qkv_b = qkv.astype(MATMUL_DTYPE)                            # single bf16 cast
    o = jnp.zeros((S, hp), jnp.float32)
    for h in range(heads):                                      # static unroll over heads
        base = 3 * hp * h                                       # [q_h | k_h | v_h]
        q = qkv_b[:, base:base + hp]
        k = qkv_b[:, base + hp:base + 2 * hp]
        v = qkv_b[:, base + 2 * hp:base + 3 * hp]
        logits = jax.lax.dot_general(q, k, (((1,), (1,)), ((), ())),
                                     preferred_element_type=jnp.float32) * scale
        m = jnp.max(logits, axis=-1, keepdims=True)
        e = jnp.exp(logits - m)
        p = e / jnp.sum(e, axis=-1, keepdims=True)              # exact softmax
        head = jnp.dot(p.astype(MATMUL_DTYPE), v, preferred_element_type=jnp.float32)
        # accumulate the output projection per head (no lane concat)
        o = o + jnp.dot(head.astype(MATMUL_DTYPE), wo_ref[h * hp:(h + 1) * hp, :],
                        preferred_element_type=jnp.float32)
    o = o + bo_ref[...]
    x1 = _ln(o, g1_ref[...], be1_ref[...], h_real) + x          # LN(attn(x)) + residual

    # ---- conv sub-layer (stays in VMEM, no HBM round trip) --------------------
    h1 = jnp.maximum(_conv1d_taps(x1, wc1_ref, bc1_ref, K), 0.0)
    c2 = _conv1d_taps(h1, wc2_ref, bc2_ref, K)
    o_ref[0] = _ln(c2, g2_ref[...], be2_ref[...], h_real) + x1


def _duration_kernel(x_ref, wc1_ref, bc1_ref, g1_ref, be1_ref,
                     wc2_ref, bc2_ref, g2_ref, be2_ref,
                     wl_ref, bl_ref, o_ref, *, K, h_real):
    x = x_ref[0]
    h = _conv1d_taps(x, wc1_ref, bc1_ref, K)
    h = jnp.maximum(_ln(h, g1_ref[...], be1_ref[...], h_real), 0.0)
    h = _conv1d_taps(h, wc2_ref, bc2_ref, K)
    h = jnp.maximum(_ln(h, g2_ref[...], be2_ref[...], h_real), 0.0)
    o_ref[0] = jnp.dot(h.astype(MATMUL_DTYPE), wl_ref[...],
                       preferred_element_type=jnp.float32) + bl_ref[...]


def _expand_kernel(idx_ref, x_ref, o_ref):
    """Length-regulator expansion as a per-frame row gather (no (L,S) matmul).

    idx_ref: (B, L) int32 in SMEM (scalar-prefetched); -1 marks a zero frame.
    """
    b = pl.program_id(0)
    L = o_ref.shape[1]

    def body(t, carry):
        src = idx_ref[b, t]
        row = x_ref[0, pl.ds(jnp.maximum(src, 0), 1), :]        # (1, Hp)
        valid = (src >= 0).astype(jnp.float32)
        o_ref[0, pl.ds(t, 1), :] = row * valid
        return carry

    jax.lax.fori_loop(0, L, body, 0)


def _rowtile_linear_kernel(x_ref, w_ref, b_ref, o_ref):
    o_ref[...] = jnp.dot(x_ref[...].astype(MATMUL_DTYPE), w_ref[...],
                         preferred_element_type=jnp.float32) + b_ref[...]


# ----------------------------------------------------------------------------
# Kernel wrappers
# ----------------------------------------------------------------------------

def fft_block(x, p, cfg):
    B, S, Hp = x.shape
    kern = functools.partial(_fft_block_kernel, heads=cfg["heads"], hp=Hp,
                             h_real=cfg["hidden"], K=cfg["kernel"])
    seq_spec = pl.BlockSpec((1, S, Hp), lambda i: (i, 0, 0))
    return pl.pallas_call(
        kern,
        out_shape=jax.ShapeDtypeStruct((B, S, Hp), jnp.float32),
        grid=(B,),
        in_specs=[seq_spec,
                  _rep_spec(p["wqkv"]), _rep_spec(p["bqkv"]),
                  _rep_spec(p["wo"]), _rep_spec(p["bo"]),
                  _rep_spec(p["g1"]), _rep_spec(p["be1"]),
                  _rep_spec(p["wc1"]), _rep_spec(p["bc1"]),
                  _rep_spec(p["wc2"]), _rep_spec(p["bc2"]),
                  _rep_spec(p["g2"]), _rep_spec(p["be2"])],
        out_specs=seq_spec,
        compiler_params=_cparams(),
    )(x, p["wqkv"], p["bqkv"], p["wo"], p["bo"], p["g1"], p["be1"],
      p["wc1"], p["bc1"], p["wc2"], p["bc2"], p["g2"], p["be2"])


def duration_predictor(x, p, cfg):
    B, S, Hp = x.shape
    kern = functools.partial(_duration_kernel, K=cfg["kernel"], h_real=cfg["hidden"])
    seq_spec = pl.BlockSpec((1, S, Hp), lambda i: (i, 0, 0))
    out_spec = pl.BlockSpec((1, S, LANE), lambda i: (i, 0, 0))
    return pl.pallas_call(
        kern,
        out_shape=jax.ShapeDtypeStruct((B, S, LANE), jnp.float32),
        grid=(B,),
        in_specs=[seq_spec,
                  _rep_spec(p["wc1"]), _rep_spec(p["bc1"]),
                  _rep_spec(p["g1"]), _rep_spec(p["be1"]),
                  _rep_spec(p["wc2"]), _rep_spec(p["bc2"]),
                  _rep_spec(p["g2"]), _rep_spec(p["be2"]),
                  _rep_spec(p["wlin"]), _rep_spec(p["blin"])],
        out_specs=out_spec,
        compiler_params=_cparams(),
    )(x, p["wc1"], p["bc1"], p["g1"], p["be1"],
      p["wc2"], p["bc2"], p["g2"], p["be2"], p["wlin"], p["blin"])


def expand_rows(idx, x):
    """Gather rows of x into (B, L, Hp) using per-frame source indices (-1 -> zero)."""
    B, S, Hp = x.shape
    L = idx.shape[1]
    grid_spec = pltpu.PrefetchScalarGridSpec(
        num_scalar_prefetch=1,
        grid=(B,),
        in_specs=[pl.BlockSpec((1, S, Hp), lambda b, idx_ref: (b, 0, 0))],
        out_specs=pl.BlockSpec((1, L, Hp), lambda b, idx_ref: (b, 0, 0)),
    )
    return pl.pallas_call(
        _expand_kernel,
        out_shape=jax.ShapeDtypeStruct((B, L, Hp), jnp.float32),
        grid_spec=grid_spec,
        compiler_params=_cparams(),
    )(idx, x)


def final_linear(x, w, b):
    """Final projection with batch*frames flattened into the matmul M dimension."""
    B, L, Hp = x.shape
    LinP = w.shape[1]
    rows = B * L
    TM = min(256, _round_up(rows, 8))
    rows_p = _round_up(rows, TM)
    x2 = x.reshape(rows, Hp)
    if rows_p != rows:
        x2 = jnp.pad(x2, ((0, rows_p - rows), (0, 0)))
    y = pl.pallas_call(
        _rowtile_linear_kernel,
        out_shape=jax.ShapeDtypeStruct((rows_p, LinP), jnp.float32),
        grid=(rows_p // TM,),
        in_specs=[pl.BlockSpec((TM, Hp), lambda i: (i, 0)),
                  _rep_spec(w), _rep_spec(b)],
        out_specs=pl.BlockSpec((TM, LinP), lambda i: (i, 0)),
        compiler_params=_cparams(),
    )(x2, w, b)
    return y[:rows].reshape(B, L, LinP)


# ----------------------------------------------------------------------------
# Model glue
# ----------------------------------------------------------------------------

def length_regulator(x, p, cfg, true_duration=None):
    B, S, Hp = x.shape
    pred_duration = duration_predictor(x, p, cfg)[:, :, 0]       # (B, S)

    if true_duration is None:
        use_duration = jnp.exp(pred_duration)
    else:
        use_duration = true_duration
    use_duration = jnp.round(use_duration).astype(jnp.int32)

    # Data-dependent output length -> resolved on host, mirroring the
    # reference's `int(torch.max(torch.sum(...)))`.
    # TODO(synk): bucket mel lengths (+ masking) to avoid retrace per length.
    length = int(jnp.max(jnp.sum(use_duration, axis=-1)))
    length = max(length, 1)   # guard the degenerate all-zero-duration case

    cum = jnp.cumsum(use_duration, axis=-1)                      # (B, S)
    t = jnp.arange(length, dtype=jnp.int32)                      # (L,)
    # Per-output-frame source row via searchsorted; no (B, L, S) temp.
    idx = jax.vmap(lambda c: jnp.searchsorted(c, t, side="right"))(cum).astype(jnp.int32)
    idx = jnp.where(t[None, :] < cum[:, -1:], idx, -1)           # frames past total -> zero

    expanded = expand_rows(idx, x)                               # (B, length, Hp)
    return expanded, pred_duration


def fastspeech_forward(params, tokens, true_duration=None):
    cfg = params["cfg"]
    x = jnp.take(params["emb"], tokens, axis=0)                  # (B, S, Hp)
    B, S, _ = x.shape
    x = x + params["pe"][:S][None, :, :]                         # phoneme PE
    for p in params["ph_blocks"]:
        x = fft_block(x, p, cfg)

    x, durations = length_regulator(x, params["lr"], cfg, true_duration)
    L = x.shape[1]
    x = x + params["pe"][:L][None, :, :]                         # melspec PE
    for p in params["mel_blocks"]:
        x = fft_block(x, p, cfg)

    y = final_linear(x, params["wlin"], params["blin"])          # (B, L, LinP)
    mel = y[:, :, :cfg["lin_size"]].transpose(0, 2, 1)           # (B, lin_size, L)
    return mel, durations


# ----------------------------------------------------------------------------
# Deterministic parameter initialization (synthetic weights, padded layout)
# ----------------------------------------------------------------------------

def _ln_gamma(h, hp):
    return jnp.pad(jnp.ones((h,), jnp.float32), (0, hp - h)).reshape(1, hp)


def _conv_weight(key, K, cin, cout, cin_p, cout_p, scale):
    w = jax.random.normal(key, (K, cin, cout), jnp.float32) * scale
    wp = jnp.pad(w, ((0, 0), (0, cin_p - cin), (0, cout_p - cout)))
    return wp.astype(MATMUL_DTYPE)                               # (K, Cin_p, Cout_p)


def positional_encoding_table(max_len, d_model, d_pad):
    pos = jnp.arange(max_len, dtype=jnp.float32)[:, None]
    div = jnp.exp(jnp.arange(0, d_model, 2, dtype=jnp.float32)
                  * (-math.log(10000.0) / d_model))
    pe = jnp.zeros((max_len, d_model), jnp.float32)
    pe = pe.at[:, 0::2].set(jnp.sin(pos * div))
    pe = pe.at[:, 1::2].set(jnp.cos(pos * div))
    return _pad2(pe, max_len, d_pad)


def init_fft_block(key, H, Hp, heads, conv_size, Cp, K, scale=0.02):
    kqkv, ko, kc1, kc2 = jax.random.split(key, 4)
    # W_QKV: per head [q | k | v], each real (H,H) block zero-padded to (Hp,Hp).
    qkv_blocks = [_pad2(jax.random.normal(kk, (H, H), jnp.float32) * scale, Hp, Hp)
                  for kk in jax.random.split(kqkv, heads * 3)]
    wqkv = jnp.concatenate(qkv_blocks, axis=1).astype(MATMUL_DTYPE)   # (Hp, heads*3*Hp)
    wo_blocks = [_pad2(jax.random.normal(kk, (H, H), jnp.float32) * scale, Hp, Hp)
                 for kk in jax.random.split(ko, heads)]
    wo = jnp.concatenate(wo_blocks, axis=0).astype(MATMUL_DTYPE)      # (heads*Hp, Hp)
    g = _ln_gamma(H, Hp)
    z = jnp.zeros((1, Hp), jnp.float32)
    return dict(
        wqkv=wqkv, bqkv=jnp.zeros((1, heads * 3 * Hp), jnp.float32),
        wo=wo, bo=jnp.zeros((1, Hp), jnp.float32),
        g1=g, be1=z,
        wc1=_conv_weight(kc1, K, H, conv_size, Hp, Cp, scale),
        bc1=jnp.zeros((1, Cp), jnp.float32),
        wc2=_conv_weight(kc2, K, conv_size, H, Cp, Hp, scale),
        bc2=jnp.zeros((1, Hp), jnp.float32),
        g2=g, be2=z,
    )


def init_length_reg(key, H, Hp, K, scale=0.02):
    kc1, kc2, kl = jax.random.split(key, 3)
    g = _ln_gamma(H, Hp)
    z = jnp.zeros((1, Hp), jnp.float32)
    return dict(
        wc1=_conv_weight(kc1, K, H, H, Hp, Hp, scale),
        bc1=jnp.zeros((1, Hp), jnp.float32), g1=g, be1=z,
        wc2=_conv_weight(kc2, K, H, H, Hp, Hp, scale),
        bc2=jnp.zeros((1, Hp), jnp.float32), g2=g, be2=z,
        wlin=_pad2(jax.random.normal(kl, (H, 1), jnp.float32) * scale,
                   Hp, LANE).astype(MATMUL_DTYPE),
        blin=jnp.zeros((1, LANE), jnp.float32),
    )


def init_params(key, vocab_size, n_ph_block, n_mel_block, H, heads, K,
                conv_size, lin_size, max_len=512, scale=0.02):
    Hp = _round_up(H, LANE)
    Cp = _round_up(conv_size, LANE)
    LinP = _round_up(lin_size, LANE)
    keys = jax.random.split(key, 2 + n_ph_block + n_mel_block + 1)
    i = 0
    emb = _pad2(jax.random.normal(keys[i], (vocab_size, H), jnp.float32) * scale,
                vocab_size, Hp); i += 1
    ph_blocks = [init_fft_block(keys[i + j], H, Hp, heads, conv_size, Cp, K, scale)
                 for j in range(n_ph_block)]; i += n_ph_block
    lr = init_length_reg(keys[i], H, Hp, K, scale); i += 1
    mel_blocks = [init_fft_block(keys[i + j], H, Hp, heads, conv_size, Cp, K, scale)
                  for j in range(n_mel_block)]; i += n_mel_block
    wlin = _pad2(jax.random.normal(keys[i], (H, lin_size), jnp.float32) * scale,
                 Hp, LinP).astype(MATMUL_DTYPE)
    blin = jnp.zeros((1, LinP), jnp.float32)
    return dict(
        cfg=dict(hidden=H, hidden_pad=Hp, heads=heads, kernel=K,
                 lin_size=lin_size, lin_pad=LinP),
        emb=emb,
        pe=positional_encoding_table(max_len, H, Hp),
        ph_blocks=ph_blocks, lr=lr, mel_blocks=mel_blocks,
        wlin=wlin, blin=blin,
    )


# ----------------------------------------------------------------------------
# Main
# ----------------------------------------------------------------------------

if __name__ == "__main__":
    key = jax.random.PRNGKey(0)
    vocab_size = 20
    B, S = 2, 8
    hidden, heads, kernel = 32, 2, 3
    conv_size, lin_size = 64, 16
    n_ph_block, n_mel_block = 2, 2

    k_params, k_tok = jax.random.split(key)
    params = init_params(
        k_params, vocab_size, n_ph_block, n_mel_block,
        hidden, heads, kernel, conv_size, lin_size, max_len=512,
    )
    tokens = jax.random.randint(k_tok, (B, S), 0, vocab_size)

    mel, durations = fastspeech_forward(params, tokens, true_duration=None)
    jax.block_until_ready(mel)
    jax.block_until_ready(durations)

    assert mel.ndim == 3 and mel.shape[0] == B and mel.shape[1] == lin_size
    assert durations.shape == (B, S)
    print("KERNEL_OK")
</pallas_src>

<mosaic_0001>
module attributes {stable_mosaic.version = 11 : i64} {
  func.func @_fft_block_kernel(%arg0: i32, %arg1: memref<1x8x128xf32, #tpu.memory_space<vmem>>, %arg2: memref<128x768xbf16, #tpu.memory_space<vmem>>, %arg3: memref<1x768xf32, #tpu.memory_space<vmem>>, %arg4: memref<256x128xbf16, #tpu.memory_space<vmem>>, %arg5: memref<1x128xf32, #tpu.memory_space<vmem>>, %arg6: memref<1x128xf32, #tpu.memory_space<vmem>>, %arg7: memref<1x128xf32, #tpu.memory_space<vmem>>, %arg8: memref<3x128x128xbf16, #tpu.memory_space<vmem>>, %arg9: memref<1x128xf32, #tpu.memory_space<vmem>>, %arg10: memref<3x128x128xbf16, #tpu.memory_space<vmem>>, %arg11: memref<1x128xf32, #tpu.memory_space<vmem>>, %arg12: memref<1x128xf32, #tpu.memory_space<vmem>>, %arg13: memref<1x128xf32, #tpu.memory_space<vmem>>, %arg14: memref<1x8x128xf32, #tpu.memory_space<vmem>>) attributes {dimension_semantics = [#tpu.dimension_semantics<parallel>], iteration_bounds = array<i64: 2>, scalar_prefetch = 0 : i64, scratch_operands = 0 : i64, tpu.core_type = #tpu.core_type<tc>, window_params = [{transform_indices = @transform_0, window_bounds = array<i64: 1, 8, 128>}, {pipeline_mode = #tpu.pipeline_mode<synchronous>, transform_indices = @transform_1, window_bounds = array<i64: 128, 768>}, {pipeline_mode = #tpu.pipeline_mode<synchronous>, transform_indices = @transform_2, window_bounds = array<i64: 1, 768>}, {pipeline_mode = #tpu.pipeline_mode<synchronous>, transform_indices = @transform_3, window_bounds = array<i64: 256, 128>}, {pipeline_mode = #tpu.pipeline_mode<synchronous>, transform_indices = @transform_4, window_bounds = array<i64: 1, 128>}, {pipeline_mode = #tpu.pipeline_mode<synchronous>, transform_indices = @transform_5, window_bounds = array<i64: 1, 128>}, {pipeline_mode = #tpu.pipeline_mode<synchronous>, transform_indices = @transform_6, window_bounds = array<i64: 1, 128>}, {pipeline_mode = #tpu.pipeline_mode<synchronous>, transform_indices = @transform_7, window_bounds = array<i64: 3, 128, 128>}, {pipeline_mode = #tpu.pipeline_mode<synchronous>, transform_indices = @transform_8, window_bounds = array<i64: 1, 128>}, {pipeline_mode = #tpu.pipeline_mode<synchronous>, transform_indices = @transform_9, window_bounds = array<i64: 3, 128, 128>}, {pipeline_mode = #tpu.pipeline_mode<synchronous>, transform_indices = @transform_10, window_bounds = array<i64: 1, 128>}, {pipeline_mode = #tpu.pipeline_mode<synchronous>, transform_indices = @transform_11, window_bounds = array<i64: 1, 128>}, {pipeline_mode = #tpu.pipeline_mode<synchronous>, transform_indices = @transform_12, window_bounds = array<i64: 1, 128>}, {transform_indices = @transform_13, window_bounds = array<i64: 1, 8, 128>}]} {
    %c0 = arith.constant 0 : index
    %c0_0 = arith.constant 0 : index
    %c0_1 = arith.constant 0 : index
    %0 = vector.load %arg1[%c0, %c0_0, %c0_1] : memref<1x8x128xf32, #tpu.memory_space<vmem>>, vector<1x8x128xf32>
    %1 = vector.shape_cast %0 : vector<1x8x128xf32> to vector<8x128xf32>
    %2 = arith.truncf %1 : vector<8x128xf32> to vector<8x128xbf16>
    %c0_2 = arith.constant 0 : index
    %c0_3 = arith.constant 0 : index
    %3 = vector.load %arg2[%c0_2, %c0_3] : memref<128x768xbf16, #tpu.memory_space<vmem>>, vector<128x768xbf16>
    %cst = arith.constant dense<0.000000e+00> : vector<8x768xf32>
    %4 = tpu.matmul %2, %3, %cst {dimension_numbers = #tpu.dot_dimension_numbers<[1], [0], [0], [1], [0, 0, 1, 1], [], []>} : vector<8x128xbf16>, vector<128x768xbf16>, vector<8x768xf32> -> vector<8x768xf32>
    %c0_4 = arith.constant 0 : index
    %c0_5 = arith.constant 0 : index
    %5 = vector.load %arg3[%c0_4, %c0_5] : memref<1x768xf32, #tpu.memory_space<vmem>>, vector<1x768xf32>
    %6 = vector.broadcast %5 : vector<1x768xf32> to vector<8x768xf32>
    %7 = arith.addf %4, %6 : vector<8x768xf32>
    %8 = arith.truncf %7 : vector<8x768xf32> to vector<8x768xbf16>
    %cst_6 = arith.constant 0.000000e+00 : f32
    %9 = vector.broadcast %cst_6 : f32 to vector<8x128xf32>
    %10 = vector.extract_strided_slice %8 {offsets = [0, 0], sizes = [8, 128], strides = [1, 1]} : vector<8x768xbf16> to vector<8x128xbf16>
    %11 = vector.extract_strided_slice %8 {offsets = [0, 128], sizes = [8, 128], strides = [1, 1]} : vector<8x768xbf16> to vector<8x128xbf16>
    %12 = vector.extract_strided_slice %8 {offsets = [0, 256], sizes = [8, 128], strides = [1, 1]} : vector<8x768xbf16> to vector<8x128xbf16>
    %cst_7 = arith.constant dense<0.000000e+00> : vector<8x8xf32>
    %13 = tpu.matmul %10, %11, %cst_7 {dimension_numbers = #tpu.dot_dimension_numbers<[1], [1], [0], [0], [0, 0, 1, 0], [], []>} : vector<8x128xbf16>, vector<8x128xbf16>, vector<8x8xf32> -> vector<8x8xf32>
    %cst_8 = arith.constant 0.176776692 : f32
    %14 = vector.broadcast %cst_8 : f32 to vector<8x8xf32>
    %15 = arith.mulf %13, %14 : vector<8x8xf32>
    %cst_9 = arith.constant dense<0xFF800000> : vector<8xf32>
    %16 = vector.multi_reduction <maximumf>, %15, %cst_9 [1] : vector<8x8xf32> to vector<8xf32>
    %17 = vector.shape_cast %16 : vector<8xf32> to vector<8x1xf32>
    %18 = vector.broadcast %17 : vector<8x1xf32> to vector<8x8xf32>
    %19 = arith.subf %15, %18 : vector<8x8xf32>
    %20 = math.exp %19 : vector<8x8xf32>
    %cst_10 = arith.constant dense<0.000000e+00> : vector<8xf32>
    %21 = vector.multi_reduction <add>, %20, %cst_10 [1] : vector<8x8xf32> to vector<8xf32>
    %22 = vector.shape_cast %21 : vector<8xf32> to vector<8x1xf32>
    %23 = vector.broadcast %22 : vector<8x1xf32> to vector<8x8xf32>
    %24 = arith.divf %20, %23 : vector<8x8xf32>
    %25 = arith.truncf %24 : vector<8x8xf32> to vector<8x8xbf16>
    %cst_11 = arith.constant dense<0.000000e+00> : vector<8x128xf32>
    %26 = tpu.matmul %25, %12, %cst_11 {dimension_numbers = #tpu.dot_dimension_numbers<[1], [0], [0], [1], [0, 0, 1, 1], [], []>} : vector<8x8xbf16>, vector<8x128xbf16>, vector<8x128xf32> -> vector<8x128xf32>
    %27 = arith.truncf %26 : vector<8x128xf32> to vector<8x128xbf16>
    %c0_12 = arith.constant 0 : index
    %c0_13 = arith.constant 0 : index
    %28 = vector.load %arg4[%c0_12, %c0_13] : memref<256x128xbf16, #tpu.memory_space<vmem>>, vector<128x128xbf16>
    %cst_14 = arith.constant dense<0.000000e+00> : vector<8x128xf32>
    %29 = tpu.matmul %27, %28, %cst_14 {dimension_numbers = #tpu.dot_dimension_numbers<[1], [0], [0], [1], [0, 0, 1, 1], [], []>} : vector<8x128xbf16>, vector<128x128xbf16>, vector<8x128xf32> -> vector<8x128xf32>
    %30 = arith.addf %9, %29 : vector<8x128xf32>
    %31 = vector.extract_strided_slice %8 {offsets = [0, 384], sizes = [8, 128], strides = [1, 1]} : vector<8x768xbf16> to vector<8x128xbf16>
    %32 = vector.extract_strided_slice %8 {offsets = [0, 512], sizes = [8, 128], strides = [1, 1]} : vector<8x768xbf16> to vector<8x128xbf16>
    %33 = vector.extract_strided_slice %8 {offsets = [0, 640], sizes = [8, 128], strides = [1, 1]} : vector<8x768xbf16> to vector<8x128xbf16>
    %cst_15 = arith.constant dense<0.000000e+00> : vector<8x8xf32>
    %34 = tpu.matmul %31, %32, %cst_15 {dimension_numbers = #tpu.dot_dimension_numbers<[1], [1], [0], [0], [0, 0, 1, 0], [], []>} : vector<8x128xbf16>, vector<8x128xbf16>, vector<8x8xf32> -> vector<8x8xf32>
    %cst_16 = arith.constant 0.176776692 : f32
    %35 = vector.broadcast %cst_16 : f32 to vector<8x8xf32>
    %36 = arith.mulf %34, %35 : vector<8x8xf32>
    %cst_17 = arith.constant dense<0xFF800000> : vector<8xf32>
    %37 = vector.multi_reduction <maximumf>, %36, %cst_17 [1] : vector<8x8xf32> to vector<8xf32>
    %38 = vector.shape_cast %37 : vector<8xf32> to vector<8x1xf32>
    %39 = vector.broadcast %38 : vector<8x1xf32> to vector<8x8xf32>
    %40 = arith.subf %36, %39 : vector<8x8xf32>
    %41 = math.exp %40 : vector<8x8xf32>
    %cst_18 = arith.constant dense<0.000000e+00> : vector<8xf32>
    %42 = vector.multi_reduction <add>, %41, %cst_18 [1] : vector<8x8xf32> to vector<8xf32>
    %43 = vector.shape_cast %42 : vector<8xf32> to vector<8x1xf32>
    %44 = vector.broadcast %43 : vector<8x1xf32> to vector<8x8xf32>
    %45 = arith.divf %41, %44 : vector<8x8xf32>
    %46 = arith.truncf %45 : vector<8x8xf32> to vector<8x8xbf16>
    %cst_19 = arith.constant dense<0.000000e+00> : vector<8x128xf32>
    %47 = tpu.matmul %46, %33, %cst_19 {dimension_numbers = #tpu.dot_dimension_numbers<[1], [0], [0], [1], [0, 0, 1, 1], [], []>} : vector<8x8xbf16>, vector<8x128xbf16>, vector<8x128xf32> -> vector<8x128xf32>
    %48 = arith.truncf %47 : vector<8x128xf32> to vector<8x128xbf16>
    %c128 = arith.constant 128 : index
    %c0_20 = arith.constant 0 : index
    %49 = vector.load %arg4[%c128, %c0_20] : memref<256x128xbf16, #tpu.memory_space<vmem>>, vector<128x128xbf16>
    %cst_21 = arith.constant dense<0.000000e+00> : vector<8x128xf32>
    %50 = tpu.matmul %48, %49, %cst_21 {dimension_numbers = #tpu.dot_dimension_numbers<[1], [0], [0], [1], [0, 0, 1, 1], [], []>} : vector<8x128xbf16>, vector<128x128xbf16>, vector<8x128xf32> -> vector<8x128xf32>
    %51 = arith.addf %30, %50 : vector<8x128xf32>
    %c0_22 = arith.constant 0 : index
    %c0_23 = arith.constant 0 : index
    %52 = vector.load %arg5[%c0_22, %c0_23] : memref<1x128xf32, #tpu.memory_space<vmem>>, vector<1x128xf32>
    %53 = vector.broadcast %52 : vector<1x128xf32> to vector<8x128xf32>
    %54 = arith.addf %51, %53 : vector<8x128xf32>
    %c0_24 = arith.constant 0 : index
    %c0_25 = arith.constant 0 : index
    %55 = vector.load %arg6[%c0_24, %c0_25] : memref<1x128xf32, #tpu.memory_space<vmem>>, vector<1x128xf32>
    %c0_26 = arith.constant 0 : index
    %c0_27 = arith.constant 0 : index
    %56 = vector.load %arg7[%c0_26, %c0_27] : memref<1x128xf32, #tpu.memory_space<vmem>>, vector<1x128xf32>
    %57 = tpu.iota {dimensions = array<i32: 1>} : vector<1x128xi32>
    %c32_i32 = arith.constant 32 : i32
    %58 = vector.broadcast %c32_i32 : i32 to vector<1x128xi32>
    %59 = arith.cmpi slt, %57, %58 : vector<1x128xi32>
    %60 = arith.extui %59 : vector<1x128xi1> to vector<1x128xi32>
    %61 = arith.sitofp %60 : vector<1x128xi32> to vector<1x128xf32>
    %cst_28 = arith.constant dense<0.000000e+00> : vector<8xf32>
    %62 = vector.multi_reduction <add>, %54, %cst_28 [1] : vector<8x128xf32> to vector<8xf32>
    %63 = vector.shape_cast %62 : vector<8xf32> to vector<8x1xf32>
    %cst_29 = arith.constant 3.125000e-02 : f32
    %64 = vector.broadcast %cst_29 : f32 to vector<8x1xf32>
    %65 = arith.mulf %63, %64 : vector<8x1xf32>
    %66 = vector.broadcast %65 : vector<8x1xf32> to vector<8x128xf32>
    %67 = arith.subf %54, %66 : vector<8x128xf32>
    %68 = vector.broadcast %61 : vector<1x128xf32> to vector<8x128xf32>
    %69 = arith.mulf %67, %68 : vector<8x128xf32>
    %70 = arith.mulf %69, %69 : vector<8x128xf32>
    %cst_30 = arith.constant dense<0.000000e+00> : vector<8xf32>
    %71 = vector.multi_reduction <add>, %70, %cst_30 [1] : vector<8x128xf32> to vector<8xf32>
    %72 = vector.shape_cast %71 : vector<8xf32> to vector<8x1xf32>
    %cst_31 = arith.constant 3.125000e-02 : f32
    %73 = vector.broadcast %cst_31 : f32 to vector<8x1xf32>
    %74 = arith.mulf %72, %73 : vector<8x1xf32>
    %cst_32 = arith.constant 9.99999974E-6 : f32
    %75 = vector.broadcast %cst_32 : f32 to vector<8x1xf32>
    %76 = arith.addf %74, %75 : vector<8x1xf32>
    %77 = math.rsqrt %76 : vector<8x1xf32>
    %78 = vector.broadcast %77 : vector<8x1xf32> to vector<8x128xf32>
    %79 = arith.mulf %69, %78 : vector<8x128xf32>
    %80 = vector.broadcast %55 : vector<1x128xf32> to vector<8x128xf32>
    %81 = arith.mulf %79, %80 : vector<8x128xf32>
    %82 = vector.broadcast %56 : vector<1x128xf32> to vector<8x128xf32>
    %83 = arith.addf %81, %82 : vector<8x128xf32>
    %84 = arith.addf %83, %1 : vector<8x128xf32>
    %85 = arith.truncf %84 : vector<8x128xf32> to vector<8x128xbf16>
    %cst_33 = arith.constant 0.000000e+00 : bf16
    %86 = vector.broadcast %cst_33 : bf16 to vector<1x128xbf16>
    %87 = tpu.concatenate %86, %85, %86 in 0 : vector<1x128xbf16>, vector<8x128xbf16>, vector<1x128xbf16> -> vector<10x128xbf16>
    %88 = vector.extract_strided_slice %87 {offsets = [0, 0], sizes = [8, 128], strides = [1, 1]} : vector<10x128xbf16> to vector<8x128xbf16>
    %c0_34 = arith.constant 0 : index
    %c0_35 = arith.constant 0 : index
    %c0_36 = arith.constant 0 : index
    %89 = vector.load %arg8[%c0_34, %c0_35, %c0_36] : memref<3x128x128xbf16, #tpu.memory_space<vmem>>, vector<1x128x128xbf16>
    %90 = vector.shape_cast %89 : vector<1x128x128xbf16> to vector<128x128xbf16>
    %cst_37 = arith.constant dense<0.000000e+00> : vector<8x128xf32>
    %91 = tpu.matmul %88, %90, %cst_37 {dimension_numbers = #tpu.dot_dimension_numbers<[1], [0], [0], [1], [0, 0, 1, 1], [], []>} : vector<8x128xbf16>, vector<128x128xbf16>, vector<8x128xf32> -> vector<8x128xf32>
    %92 = vector.extract_strided_slice %87 {offsets = [1, 0], sizes = [8, 128], strides = [1, 1]} : vector<10x128xbf16> to vector<8x128xbf16>
    %c1 = arith.constant 1 : index
    %c0_38 = arith.constant 0 : index
    %c0_39 = arith.constant 0 : index
    %93 = vector.load %arg8[%c1, %c0_38, %c0_39] : memref<3x128x128xbf16, #tpu.memory_space<vmem>>, vector<1x128x128xbf16>
    %94 = vector.shape_cast %93 : vector<1x128x128xbf16> to vector<128x128xbf16>
    %cst_40 = arith.constant dense<0.000000e+00> : vector<8x128xf32>
    %95 = tpu.matmul %92, %94, %cst_40 {dimension_numbers = #tpu.dot_dimension_numbers<[1], [0], [0], [1], [0, 0, 1, 1], [], []>} : vector<8x128xbf16>, vector<128x128xbf16>, vector<8x128xf32> -> vector<8x128xf32>
    %96 = arith.addf %91, %95 : vector<8x128xf32>
    %97 = vector.extract_strided_slice %87 {offsets = [2, 0], sizes = [8, 128], strides = [1, 1]} : vector<10x128xbf16> to vector<8x128xbf16>
    %c2 = arith.constant 2 : index
    %c0_41 = arith.constant 0 : index
    %c0_42 = arith.constant 0 : index
    %98 = vector.load %arg8[%c2, %c0_41, %c0_42] : memref<3x128x128xbf16, #tpu.memory_space<vmem>>, vector<1x128x128xbf16>
    %99 = vector.shape_cast %98 : vector<1x128x128xbf16> to vector<128x128xbf16>
    %cst_43 = arith.constant dense<0.000000e+00> : vector<8x128xf32>
    %100 = tpu.matmul %97, %99, %cst_43 {dimension_numbers = #tpu.dot_dimension_numbers<[1], [0], [0], [1], [0, 0, 1, 1], [], []>} : vector<8x128xbf16>, vector<128x128xbf16>, vector<8x128xf32> -> vector<8x128xf32>
    %101 = arith.addf %96, %100 : vector<8x128xf32>
    %c0_44 = arith.constant 0 : index
    %c0_45 = arith.constant 0 : index
    %102 = vector.load %arg9[%c0_44, %c0_45] : memref<1x128xf32, #tpu.memory_space<vmem>>, vector<1x128xf32>
    %103 = vector.broadcast %102 : vector<1x128xf32> to vector<8x128xf32>
    %104 = arith.addf %101, %103 : vector<8x128xf32>
    %cst_46 = arith.constant 0.000000e+00 : f32
    %105 = vector.broadcast %cst_46 : f32 to vector<8x128xf32>
    %106 = arith.maximumf %104, %105 : vector<8x128xf32>
    %107 = arith.truncf %106 : vector<8x128xf32> to vector<8x128xbf16>
    %cst_47 = arith.constant 0.000000e+00 : bf16
    %108 = vector.broadcast %cst_47 : bf16 to vector<1x128xbf16>
    %109 = tpu.concatenate %108, %107, %108 in 0 : vector<1x128xbf16>, vector<8x128xbf16>, vector<1x128xbf16> -> vector<10x128xbf16>
    %110 = vector.extract_strided_slice %109 {offsets = [0, 0], sizes = [8, 128], strides = [1, 1]} : vector<10x128xbf16> to vector<8x128xbf16>
    %c0_48 = arith.constant 0 : index
    %c0_49 = arith.constant 0 : index
    %c0_50 = arith.constant 0 : index
    %111 = vector.load %arg10[%c0_48, %c0_49, %c0_50] : memref<3x128x128xbf16, #tpu.memory_space<vmem>>, vector<1x128x128xbf16>
    %112 = vector.shape_cast %111 : vector<1x128x128xbf16> to vector<128x128xbf16>
    %cst_51 = arith.constant dense<0.000000e+00> : vector<8x128xf32>
    %113 = tpu.matmul %110, %112, %cst_51 {dimension_numbers = #tpu.dot_dimension_numbers<[1], [0], [0], [1], [0, 0, 1, 1], [], []>} : vector<8x128xbf16>, vector<128x128xbf16>, vector<8x128xf32> -> vector<8x128xf32>
    %114 = vector.extract_strided_slice %109 {offsets = [1, 0], sizes = [8, 128], strides = [1, 1]} : vector<10x128xbf16> to vector<8x128xbf16>
    %c1_52 = arith.constant 1 : index
    %c0_53 = arith.constant 0 : index
    %c0_54 = arith.constant 0 : index
    %115 = vector.load %arg10[%c1_52, %c0_53, %c0_54] : memref<3x128x128xbf16, #tpu.memory_space<vmem>>, vector<1x128x128xbf16>
    %116 = vector.shape_cast %115 : vector<1x128x128xbf16> to vector<128x128xbf16>
    %cst_55 = arith.constant dense<0.000000e+00> : vector<8x128xf32>
    %117 = tpu.matmul %114, %116, %cst_55 {dimension_numbers = #tpu.dot_dimension_numbers<[1], [0], [0], [1], [0, 0, 1, 1], [], []>} : vector<8x128xbf16>, vector<128x128xbf16>, vector<8x128xf32> -> vector<8x128xf32>
    %118 = arith.addf %113, %117 : vector<8x128xf32>
    %119 = vector.extract_strided_slice %109 {offsets = [2, 0], sizes = [8, 128], strides = [1, 1]} : vector<10x128xbf16> to vector<8x128xbf16>
    %c2_56 = arith.constant 2 : index
    %c0_57 = arith.constant 0 : index
    %c0_58 = arith.constant 0 : index
    %120 = vector.load %arg10[%c2_56, %c0_57, %c0_58] : memref<3x128x128xbf16, #tpu.memory_space<vmem>>, vector<1x128x128xbf16>
    %121 = vector.shape_cast %120 : vector<1x128x128xbf16> to vector<128x128xbf16>
    %cst_59 = arith.constant dense<0.000000e+00> : vector<8x128xf32>
    %122 = tpu.matmul %119, %121, %cst_59 {dimension_numbers = #tpu.dot_dimension_numbers<[1], [0], [0], [1], [0, 0, 1, 1], [], []>} : vector<8x128xbf16>, vector<128x128xbf16>, vector<8x128xf32> -> vector<8x128xf32>
    %123 = arith.addf %118, %122 : vector<8x128xf32>
    %c0_60 = arith.constant 0 : index
    %c0_61 = arith.constant 0 : index
    %124 = vector.load %arg11[%c0_60, %c0_61] : memref<1x128xf32, #tpu.memory_space<vmem>>, vector<1x128xf32>
    %125 = vector.broadcast %124 : vector<1x128xf32> to vector<8x128xf32>
    %126 = arith.addf %123, %125 : vector<8x128xf32>
    %c0_62 = arith.constant 0 : index
    %c0_63 = arith.constant 0 : index
    %127 = vector.load %arg12[%c0_62, %c0_63] : memref<1x128xf32, #tpu.memory_space<vmem>>, vector<1x128xf32>
    %c0_64 = arith.constant 0 : index
    %c0_65 = arith.constant 0 : index
    %128 = vector.load %arg13[%c0_64, %c0_65] : memref<1x128xf32, #tpu.memory_space<vmem>>, vector<1x128xf32>
    %129 = tpu.iota {dimensions = array<i32: 1>} : vector<1x128xi32>
    %c32_i32_66 = arith.constant 32 : i32
    %130 = vector.broadcast %c32_i32_66 : i32 to vector<1x128xi32>
    %131 = arith.cmpi slt, %129, %130 : vector<1x128xi32>
    %132 = arith.extui %131 : vector<1x128xi1> to vector<1x128xi32>
    %133 = arith.sitofp %132 : vector<1x128xi32> to vector<1x128xf32>
    %cst_67 = arith.constant dense<0.000000e+00> : vector<8xf32>
    %134 = vector.multi_reduction <add>, %126, %cst_67 [1] : vector<8x128xf32> to vector<8xf32>
    %135 = vector.shape_cast %134 : vector<8xf32> to vector<8x1xf32>
    %cst_68 = arith.constant 3.125000e-02 : f32
    %136 = vector.broadcast %cst_68 : f32 to vector<8x1xf32>
    %137 = arith.mulf %135, %136 : vector<8x1xf32>
    %138 = vector.broadcast %137 : vector<8x1xf32> to vector<8x128xf32>
    %139 = arith.subf %126, %138 : vector<8x128xf32>
    %140 = vector.broadcast %133 : vector<1x128xf32> to vector<8x128xf32>
    %141 = arith.mulf %139, %140 : vector<8x128xf32>
    %142 = arith.mulf %141, %141 : vector<8x128xf32>
    %cst_69 = arith.constant dense<0.000000e+00> : vector<8xf32>
    %143 = vector.multi_reduction <add>, %142, %cst_69 [1] : vector<8x128xf32> to vector<8xf32>
    %144 = vector.shape_cast %143 : vector<8xf32> to vector<8x1xf32>
    %cst_70 = arith.constant 3.125000e-02 : f32
    %145 = vector.broadcast %cst_70 : f32 to vector<8x1xf32>
    %146 = arith.mulf %144, %145 : vector<8x1xf32>
    %cst_71 = arith.constant 9.99999974E-6 : f32
    %147 = vector.broadcast %cst_71 : f32 to vector<8x1xf32>
    %148 = arith.addf %146, %147 : vector<8x1xf32>
    %149 = math.rsqrt %148 : vector<8x1xf32>
    %150 = vector.broadcast %149 : vector<8x1xf32> to vector<8x128xf32>
    %151 = arith.mulf %141, %150 : vector<8x128xf32>
    %152 = vector.broadcast %127 : vector<1x128xf32> to vector<8x128xf32>
    %153 = arith.mulf %151, %152 : vector<8x128xf32>
    %154 = vector.broadcast %128 : vector<1x128xf32> to vector<8x128xf32>
    %155 = arith.addf %153, %154 : vector<8x128xf32>
    %156 = arith.addf %155, %84 : vector<8x128xf32>
    %c0_72 = arith.constant 0 : index
    %c0_73 = arith.constant 0 : index
    %c0_74 = arith.constant 0 : index
    %157 = vector.load %arg14[%c0_72, %c0_73, %c0_74] : memref<1x8x128xf32, #tpu.memory_space<vmem>>, vector<1x8x128xf32>
    %158 = vector.shape_cast %157 : vector<1x8x128xf32> to vector<8x128xf32>
    %159 = vector.shape_cast %156 : vector<8x128xf32> to vector<1x8x128xf32>
    tpu.vector_store %arg14[%c0_72, %c0_73, %c0_74], %159 {strides = array<i32>} : memref<1x8x128xf32, #tpu.memory_space<vmem>>, vector<1x8x128xf32>,
    return
  }
  func.func @transform_0(%arg0: i32) -> (i32, i32, i32) {
    %c0_i32 = arith.constant 0 : i32
    %c0_i32_0 = arith.constant 0 : i32
    %c0_i32_1 = arith.constant 0 : i32
    return %arg0, %c0_i32, %c0_i32_0 : i32, i32, i32
  }
  func.func @transform_1(%arg0: i32) -> (i32, i32) {
    %c0_i32 = arith.constant 0 : i32
    %c0_i32_0 = arith.constant 0 : i32
    %c0_i32_1 = arith.constant 0 : i32
    return %c0_i32, %c0_i32_0 : i32, i32
  }
  func.func @transform_2(%arg0: i32) -> (i32, i32) {
    %c0_i32 = arith.constant 0 : i32
    %c0_i32_0 = arith.constant 0 : i32
    %c0_i32_1 = arith.constant 0 : i32
    return %c0_i32, %c0_i32_0 : i32, i32
  }
  func.func @transform_3(%arg0: i32) -> (i32, i32) {
    %c0_i32 = arith.constant 0 : i32
    %c0_i32_0 = arith.constant 0 : i32
    %c0_i32_1 = arith.constant 0 : i32
    return %c0_i32, %c0_i32_0 : i32, i32
  }
  func.func @transform_4(%arg0: i32) -> (i32, i32) {
    %c0_i32 = arith.constant 0 : i32
    %c0_i32_0 = arith.constant 0 : i32
    %c0_i32_1 = arith.constant 0 : i32
    return %c0_i32, %c0_i32_0 : i32, i32
  }
  func.func @transform_5(%arg0: i32) -> (i32, i32) {
    %c0_i32 = arith.constant 0 : i32
    %c0_i32_0 = arith.constant 0 : i32
    %c0_i32_1 = arith.constant 0 : i32
    return %c0_i32, %c0_i32_0 : i32, i32
  }
  func.func @transform_6(%arg0: i32) -> (i32, i32) {
    %c0_i32 = arith.constant 0 : i32
    %c0_i32_0 = arith.constant 0 : i32
    %c0_i32_1 = arith.constant 0 : i32
    return %c0_i32, %c0_i32_0 : i32, i32
  }
  func.func @transform_7(%arg0: i32) -> (i32, i32, i32) {
    %c0_i32 = arith.constant 0 : i32
    %c0_i32_0 = arith.constant 0 : i32
    %c0_i32_1 = arith.constant 0 : i32
    %c0_i32_2 = arith.constant 0 : i32
    return %c0_i32, %c0_i32_0, %c0_i32_1 : i32, i32, i32
  }
  func.func @transform_8(%arg0: i32) -> (i32, i32) {
    %c0_i32 = arith.constant 0 : i32
    %c0_i32_0 = arith.constant 0 : i32
    %c0_i32_1 = arith.constant 0 : i32
    return %c0_i32, %c0_i32_0 : i32, i32
  }
  func.func @transform_9(%arg0: i32) -> (i32, i32, i32) {
    %c0_i32 = arith.constant 0 : i32
    %c0_i32_0 = arith.constant 0 : i32
    %c0_i32_1 = arith.constant 0 : i32
    %c0_i32_2 = arith.constant 0 : i32
    return %c0_i32, %c0_i32_0, %c0_i32_1 : i32, i32, i32
  }
  func.func @transform_10(%arg0: i32) -> (i32, i32) {
    %c0_i32 = arith.constant 0 : i32
    %c0_i32_0 = arith.constant 0 : i32
    %c0_i32_1 = arith.constant 0 : i32
    return %c0_i32, %c0_i32_0 : i32, i32
  }
  func.func @transform_11(%arg0: i32) -> (i32, i32) {
    %c0_i32 = arith.constant 0 : i32
    %c0_i32_0 = arith.constant 0 : i32
    %c0_i32_1 = arith.constant 0 : i32
    return %c0_i32, %c0_i32_0 : i32, i32
  }
  func.func @transform_12(%arg0: i32) -> (i32, i32) {
    %c0_i32 = arith.constant 0 : i32
    %c0_i32_0 = arith.constant 0 : i32
    %c0_i32_1 = arith.constant 0 : i32
    return %c0_i32, %c0_i32_0 : i32, i32
  }
  func.func @transform_13(%arg0: i32) -> (i32, i32, i32) {
    %c0_i32 = arith.constant 0 : i32
    %c0_i32_0 = arith.constant 0 : i32
    %c0_i32_1 = arith.constant 0 : i32
    return %arg0, %c0_i32, %c0_i32_0 : i32, i32, i32
  }
}

</mosaic_0001>

<bundles_post_ra>
// kernel: tpu_custom_call.1
= control target key start
LH: loop header
LB: loop body
LE: loop exit
PB: predicated region body
PF: predicated region fallthrough
CT: control target
= control target key end

     0   :  { %s3696_s0 = inlined_call_operand.hbm [shape: f32[2,8,128], index: 0, kind: input, shape index: {}]   ;;  %s3697_s1 = inlined_call_operand.hbm [shape: bf16[128,768], index: 1, kind: input, shape index: {}]   ;;  %s3698_s2 = inlined_call_operand.vmem [shape: f32[1,768], index: 2, kind: input, shape index: {}]   ;;  %s3699_s3 = inlined_call_operand.hbm [shape: bf16[256,128], index: 3, kind: input, shape index: {}]   ;;  %s3700_s4 = inlined_call_operand.vmem [shape: f32[1,128], index: 4, kind: input, shape index: {}]   ;;  %s3701_s5 = inlined_call_operand.vmem [shape: f32[1,128], index: 5, kind: input, shape index: {}]   ;;  %s3702_s6 = inlined_call_operand.vmem [shape: f32[1,128], index: 6, kind: input, shape index: {}]   ;;  %s3703_s7 = inlined_call_operand.hbm [shape: bf16[3,128,128], index: 7, kind: input, shape index: {}]   ;;  %s3704_s8 = inlined_call_operand.vmem [shape: f32[1,128], index: 8, kind: input, shape index: {}]   ;;  %s3705_s9 = inlined_call_operand.hbm [shape: bf16[3,128,128], index: 9, kind: input, shape index: {}]   ;;  %s3706_s10 = inlined_call_operand.vmem [shape: f32[1,128], index: 10, kind: input, shape index: {}]   ;;  %s3707_s11 = inlined_call_operand.vmem [shape: f32[1,128], index: 11, kind: input, shape index: {}]   ;;  %s3708_s12 = inlined_call_operand.vmem [shape: f32[1,128], index: 12, kind: input, shape index: {}]   ;;  %s3709_s13 = inlined_call_operand.hbm [shape: f32[2,8,128], index: 13, kind: output, shape index: {}]  }
   0x1   :  { %3714 = sst [smem:[#allocation16_spill]] %s3696_s0 }
   0x2   :  { %3715 = sst [smem:[#allocation17_spill]] %s3697_s1 }
   0x3   :  { %3716 = sst [smem:[#allocation18_spill]] %s3704_s8 }
   0x4   :  { %3717 = sst [smem:[#allocation19_spill]] %s3706_s10 }
   0x5   :  { %3718 = sst [smem:[#allocation20_spill]] %s3707_s11 }
   0x6   :  { %3719 = sst [smem:[#allocation21_spill]] %s3708_s12 }
   0x7   :  { %3720 = sst [smem:[#allocation22_spill]] %s3709_s13 }
   0x8   :  { %18 = vsyncpa [#allocation3], 0 }
   0x9   :  { %20 = vsyncpa [#allocation3 + $0x1], 0 }
   0xa   :  { %21 = vsyncpa [#allocation6], 0 }
   0xb   :  { %22 = vsyncpa [#allocation9], 0 }
   0xc   :  { %23 = vsyncpa [#allocation4], 0 }
   0xd   :  { %25 = vsyncpa [#allocation4 + $0x1], 0  ;;  %s3216_s25 = smov 0   ;;  %s3218_s26 = smov 0  }
   0xe   :  { %s3220_s27 = smov 0   ;;  %s3222_s28 = smov 0  }
   0xf LB: > { %s3133_s29 = smov [#allocation5]   ;;  %s3237_s14 = sadd.s32 4294967295, %s3131_s28   ;;  %s3131_s28 = sphi %s3222_s28, %s3752_s28   ;;  %s3127_s27 = sphi %s3220_s27, %s3751_s27   ;;  %s3123_s26 = sphi %s3218_s26, %s3750_s26   ;;  %s3119_s25 = sphi %s3216_s25, %s3749_s25  }
  0x10   : > { %s352_s30 = sshll.u32 %s3133_s29, 4  ;;  %p2268_p0 = scmp.ge.s32.totalorder %s3131_s28, 1  ;;  %s3242_s30 = int_to_ptr.vmem [resolvable:$true] %s352_s30 }
  0x11   : > { %p3711_p1 = scmp.eq.s32.totalorder %s3237_s14, 0  ;;  %p340_p2 = scmp.lt.s32.totalorder %s3131_s28, 3 }
  0x12   : > { %s3134_s17 = smov [#allocation8]   ;;  %s3135_s19 = smov [#allocation7]  }
  0x13   : > { %p3244_p3 = pnand %p2268_p0, %p340_p2  ;;  %s390_s18 = sshll.u32 %s3134_s17, 4  ;;  %s3257_s18 = int_to_ptr.vmem [resolvable:$true] %s390_s18 }
  0x14   : > { %s3259_s20 = sshll.u32 %s3135_s19, 4  ;;  %s3723_s1 = sld [smem:[#allocation17_spill]]  ;;  %s369_s20 = int_to_ptr.vmem [resolvable:$true] %s3259_s20 }
  0x15   : > { %s3721_s15 = scalar_select %p3244_p3, 1, 0 }
  0x16   : > { %p2693_p5 = pneg %p3244_p3 }
  0x18   : > { %p3253_p6 = pnand %p2693_p5, %p3711_p1 }
  0x1a   : > { %s2915_s23 = scalar_lea.hbm %s3723_s1, 6144  ;;  %p3269_p8 = pneg %p3253_p6 }
  0x1b   : > { %p2916_p7 = scmp.ne.s32.totalorder %s3723_s1, %s2915_s23  ;;  %p2922_p11 = scmp.lt.u32.totalorder %s2915_s23, %s3723_s1 }
  0x1d   : > { %p2918_p9 = pnand %p3269_p8, %p2916_p7 }
  0x1f   : > { %p2919_p10 = pneg %p2918_p9 }
  0x21   : > { %p2924_p12 = pnand %p2922_p11, %p2919_p10 }
  0x23   : > { %2927 = shalt.err (!%p2924_p12)
}
  0x24   : > { %s2928_s21 = scalar_lea.vmem %s3242_s30, 6144  ;;  %p2936_p5 = scmp.lt.s32.totalorder %s3242_s30, %s3242_s30 }
  0x25   : > { %p2929_p13 = scmp.ne.s32.totalorder %s3242_s30, %s2928_s21  ;;  %p2937_p4 = scmp.lt.s32.totalorder %s2928_s21, %s2928_s21 }
  0x27   : > { %p2931_p0 = pnand %p2929_p13, %p3269_p8  ;;  %p2938_p7 = por %p2937_p4, %p2936_p5 }
  0x29   : > { %p2932_p2 = pneg %p2931_p0 }
  0x2b   : > { %p2939_p9 = pnand %p2938_p7, %p2932_p2 }
  0x2d   : > { %2942 = shalt.err (!%p2939_p9)
}
  0x2e   : > { %s3136_s22 = smov 384   ;;  %s3137_s23 = smov 24  }
  0x2f   : > { %2696 = dma.hbm_to_vmem [thread:$0]  (!%p3253_p6), %s3723_s1, 6144, %s3242_s30, [#allocation6], %s3136_s22, %s3136_s22, %s3137_s23  }
  0x30   : > { %s2943_s12 = scalar_lea.hbm %s3703_s7, 3072 }
  0x31   : > { %p2944_p4 = scmp.ne.s32.totalorder %s3703_s7, %s2943_s12  ;;  %p2950_p12 = scmp.lt.u32.totalorder %s2943_s12, %s3703_s7 }
  0x33   : > { %p2946_p10 = pnand %p2944_p4, %p3269_p8 }
  0x35   : > { %p2947_p11 = pneg %p2946_p10 }
  0x37   : > { %p2952_p13 = pnand %p2950_p12, %p2947_p11 }
  0x39   : > { %2955 = shalt.err (!%p2952_p13)
}
  0x3a   : > { %s2956_s30 = scalar_lea.vmem %s3257_s18, 3072  ;;  %p2964_p7 = scmp.lt.s32.totalorder %s3257_s18, %s3257_s18 }
  0x3b   : > { %p2957_p0 = scmp.ne.s32.totalorder %s3257_s18, %s2956_s30  ;;  %p2965_p9 = scmp.lt.s32.totalorder %s2956_s30, %s2956_s30 }
  0x3d   : > { %p2959_p2 = pnand %p2957_p0, %p3269_p8  ;;  %p2966_p4 = por %p2965_p9, %p2964_p7 }
  0x3f   : > { %p2960_p5 = pneg %p2959_p2 }
  0x41   : > { %p2967_p10 = pnand %p2966_p4, %p2960_p5 }
  0x43   : > { %2970 = shalt.err (!%p2967_p10)
}
  0x44   : > { %s3138_s10 = smov 64   ;;  %s3139_s8 = smov 4  }
  0x45   : > { %2702 = dma.hbm_to_vmem [thread:$0]  (!%p3253_p6), %s3703_s7, 3072, %s3257_s18, [#allocation9], %s3138_s10, %s3138_s10, %s3139_s8  }
  0x46   : > { %s2971_s24 = scalar_lea.hbm %s3699_s3, 2048 }
  0x47   : > { %p2972_p11 = scmp.ne.s32.totalorder %s3699_s3, %s2971_s24  ;;  %p2978_p0 = scmp.lt.u32.totalorder %s2971_s24, %s3699_s3 }
  0x49   : > { %p2974_p12 = pnand %p2972_p11, %p3269_p8 }
  0x4b   : > { %p2975_p13 = pneg %p2974_p12 }
  0x4d   : > { %p2980_p2 = pnand %p2978_p0, %p2975_p13 }
  0x4f   : > { %2983 = shalt.err (!%p2980_p2)
}
  0x50   : > { %s2984_s30 = scalar_lea.vmem %s369_s20, 2048  ;;  %p2992_p4 = scmp.lt.s32.totalorder %s369_s20, %s369_s20 }
  0x51   : > { %p2985_p5 = scmp.ne.s32.totalorder %s369_s20, %s2984_s30  ;;  %p2993_p10 = scmp.lt.s32.totalorder %s2984_s30, %s2984_s30 }
  0x53   : > { %p2987_p7 = pnand %p2985_p5, %p3269_p8  ;;  %p2994_p1 = por %p2993_p10, %p2992_p4 }
  0x55   : > { %p2988_p9 = pneg %p2987_p7 }
  0x57   : > { %p2995_p3 = pnand %p2994_p1, %p2988_p9 }
  0x59   : > { %2998 = shalt.err (!%p2995_p3)
}
  0x5a   : > { %2699 = dma.hbm_to_vmem [thread:$0]  (!%p3253_p6), %s3699_s3, 2048, %s369_s20, [#allocation6], %s3138_s10, %s3138_s10, %s3139_s8  }
  0x5b   : > { %s3140_s12 = smov [#allocation10]   ;;  %s2999_s29 = scalar_lea.hbm %s3705_s9, 3072 }
  0x5c   : > { %s406_s22 = sshll.u32 %s3140_s12, 4  ;;  %p3000_p1 = scmp.ne.s32.totalorder %s3705_s9, %s2999_s29  ;;  %s407_s22 = int_to_ptr.vmem [resolvable:$true] %s406_s22 }
  0x5d   : > { %p3006_p12 = scmp.lt.u32.totalorder %s2999_s29, %s3705_s9 }
  0x5e   : > { %p3002_p3 = pnand %p3000_p1, %p3269_p8 }
  0x60   : > { %p3003_p11 = pneg %p3002_p3 }
  0x62   : > { %p3008_p13 = pnand %p3006_p12, %p3003_p11 }
  0x64   : > { %3011 = shalt.err (!%p3008_p13)
}
  0x65   : > { %s3012_s20 = scalar_lea.vmem %s407_s22, 3072  ;;  %p3020_p7 = scmp.lt.s32.totalorder %s407_s22, %s407_s22 }
  0x66   : > { %p3013_p0 = scmp.ne.s32.totalorder %s407_s22, %s3012_s20  ;;  %p3021_p9 = scmp.lt.s32.totalorder %s3012_s20, %s3012_s20 }
  0x68   : > { %p3015_p2 = pnand %p3013_p0, %p3269_p8  ;;  %p3022_p4 = por %p3021_p9, %p3020_p7 }
  0x6a   : > { %p3016_p5 = pneg %p3015_p2 }
  0x6c   : > { %p3023_p10 = pnand %p3022_p4, %p3016_p5 }
  0x6e   : > { %3026 = shalt.err (!%p3023_p10)
}
  0x6f   : > { %2705 = dma.hbm_to_vmem [thread:$0]  (!%p3253_p6), %s3705_s9, 3072, %s407_s22, [#allocation9], %s3138_s10, %s3138_s10, %s3139_s8  }
  0x70   : > { %s2267_s13 = sadd.s32 4294967294, %s3131_s28   ;;  %s3361_s16 = sadd.s32 1, %s3131_s28  }
  0x71   : > { %s35_s12 = ssub.s32 %s3131_s28, %s3361_s16  ;;  %s38_s23 = sadd.s32 1, %s3127_s27 }
  0x72   : > { %p36_p8 = scmp.eq.s32.totalorder %s35_s12, 0  ;;  %p45_p1 = scmp.ne.s32.totalorder %s3127_s27, %s3123_s26 }
  0x73   : > { %p46_p3 = scmp.eq.s32.totalorder %s3131_s28, 0  ;;  %p51_p11 = scmp.ne.s32.totalorder %s3123_s26, %s3119_s25 }
  0x74   : > { %s3372_s24 = scalar_select %p36_p8, %s3127_s27, %s38_s23  }
  0x75   : > { %p3374_p12 = por %p46_p3, %p45_p1  ;;  %p3726_p13 = scmp.eq.s32.totalorder %s3237_s14, 0 }
  0x76   : > { %p327_p0 = scmp.eq.s32.totalorder %s3237_s14, 1  ;;  %p333_p2 = scmp.eq.s32.totalorder %s2267_s13, 1 }
  0x77   : > { %p3380_p6 = por %p3726_p13, %p51_p11  ;;  %p2718_p5 = scmp.lt.s32.totalorder %s3131_s28, 2 }
  0x78   : > { %s429_s8 = sand.u32 1, %s3127_s27   ;;  %p3387_p7 = por %p327_p0, %p45_p1 }
  0x79   : > { %p3391_p9 = por %p333_p2, %p51_p11  ;;  %s2274_s19 = sshll.u32 %s429_s8, 3 }
  0x7a   : > { %s3728_s22 = scalar_select %p3387_p7, 1, 0 }
  0x7b   : > { %s3729_s17 = scalar_select %p3391_p9, 1, 0 }
  0x7c   : > { %s2275_s21 = sshll.u32 %s3131_s28, 7  ;;  %s3730_s0 = sld [smem:[#allocation16_spill]] }
  0x7d   : > { %s433_s11 = scalar_lea.vmem [#allocation2], %s2274_s19  ;;  %p3405_p4 = pnand %p2718_p5, %p3374_p12 }
  0x7e   : > { %s440_s13 = sshll.u32 %s433_s11, 4  ;;  %s430_s23 = scalar_lea.sflag [#allocation3], %s429_s8  ;;  %s3401_s13 = int_to_ptr.vmem [resolvable:$true] %s440_s13 }
  0x7f   : > { %p3029_p8 = pneg %p3405_p4 }
  0x82   : > { %s3399_s18 = scalar_lea.hbm %s3730_s0, %s2275_s21  ;;  %s3032_s30 = scalar_lea.hbm %s3730_s0, 256 }
  0x83   : > { %s3027_s1 = scalar_lea.hbm %s3399_s18, 128  ;;  %p3033_p11 = scmp.lt.u32.totalorder %s3399_s18, %s3730_s0 }
  0x84   : > { %p3028_p10 = scmp.ne.s32.totalorder %s3399_s18, %s3027_s1  ;;  %p3034_p12 = scmp.lt.u32.totalorder %s3032_s30, %s3027_s1 }
  0x85   : > { %p3036_p0 = scmp.lt.u32.totalorder %s3027_s1, %s3399_s18 }
  0x86   : > { %p3030_p1 = pnand %p3029_p8, %p3028_p10  ;;  %p3035_p13 = por %p3034_p12, %p3033_p11 }
  0x88   : > { %p3031_p3 = pneg %p3030_p1  ;;  %p3037_p2 = por %p3036_p0, %p3035_p13 }
  0x8a   : > { %p3038_p5 = pnand %p3037_p2, %p3031_p3 }
  0x8c   : > { %3041 = shalt.err (!%p3038_p5)
}
  0x8d   : > { %s3042_s8 = scalar_lea.vmem %s3401_s13, 128  ;;  %s3141_s11 = smov [#allocation2]  }
  0x8e   : > { %p3043_p10 = scmp.ne.s32.totalorder %s3401_s13, %s3042_s8  ;;  %s3047_s19 = sshll.u32 %s3141_s11, 4  ;;  %s3048_s19 = int_to_ptr.vmem [resolvable:$false] %s3047_s19 }
  0x8f   : > { %s3049_s21 = scalar_lea.vmem %s3048_s19, 256  ;;  %p3050_p7 = scmp.lt.s32.totalorder %s3401_s13, %s3048_s19 }
  0x90   : > { %p3045_p1 = pnand %p3043_p10, %p3029_p8  ;;  %p3051_p11 = scmp.lt.s32.totalorder %s3049_s21, %s3042_s8 }
  0x92   : > { %p3046_p9 = pneg %p3045_p1  ;;  %p3052_p12 = por %p3051_p11, %p3050_p7 }
  0x94   : > { %p3053_p13 = pnand %p3052_p12, %p3046_p9 }
  0x96   : > { %3056 = shalt.err (!%p3053_p13)
}
  0x97   : > { %2709 = dma.hbm_to_vmem [thread:$0]  (!%p3405_p4), %s3399_s18, 128, %s3401_s13, %s430_s23  }
  0x98   : > { %p3732_p3 = scmp.ne.s32.totalorder %s3721_s15, 0 }
  0x99   : > { %s3437_s1 = sand.u32 (!%p3732_p3), 1, %s3123_s26  }
  0x9a   : > { %449 = sbr.rel (%p3732_p3) target bundleno = 3098 (0xc1a), region = 72  ;;  %s2277_s30 = sshll.u32 (!%p3732_p3), %s3437_s1, 3 }
  0x9b   : > { %s452_s29 = scalar_lea.sflag (!%p3732_p3), [#allocation3], %s3437_s1  ;;  %s3443_s20 = scalar_lea.vmem (!%p3732_p3), [#allocation2], %s2277_s30 }
  0xa1   : > { %3102 = dma.done.wait (%p3380_p6), %s452_s29, 128  }
  0xa2   : > { %3104 = vsyncadd (%p3380_p6), %s452_s29, 4294967168  ;;  %p3733_p7 = scmp.eq.s32.totalorder %s3237_s14, 0 }
  0xa4   : > { %3106 = dma.done.wait (%p3733_p7), [#allocation6], 8192   ;;  %p3734_p9 = pmov %p3733_p7 }
  0xa5   : > { %p3735_p4 = pmov %p3733_p7 }
  0xa6   : > { %3108 = vsyncadd (%p3734_p9), [#allocation6], 4294959104 }
  0xa7   : > { %3110 = dma.done.wait (%p3735_p4), [#allocation9], 6144   ;;  %p3736_p8 = pmov %p3735_p4 }
  0xa8   : > { %v3142_v0 = vmov 0   ;;  %v2767_v1 = vld [vmem:[#allocation5 + $0x4] ss:$24 sps:$4 sm:$0xff]   ;;  %v2769_v2 = vld [vmem:[#allocation5] ss:$24 sps:$4 sm:$0xff]   ;;  %v3143_v35 = vmov 0.0   ;;  %v567_v36 = vlaneseq }
  0xa9   : > { %3112 = vsyncadd (%p3736_p8), [#allocation9], 4294961152  ;;  %869 = vmatprep.mubr.bf16.mxu0 %v3142_v0  ;;  %910 = vmatprep.mubr.bf16.mxu1 %v3142_v0  ;;  %v2770_v3 = vld [vmem:[#allocation5 + $0x34] ss:$24 sps:$4 sm:$0xff]   ;;  %v2772_v4 = vld [vmem:[#allocation5 + $0x30] ss:$24 sps:$4 sm:$0xff]  }
  0xaa   : > { %837 = vmatprep.subr.bf16.mxu0 %v2767_v1  ;;  %v2773_v5 = vld [vmem:[#allocation5 + $0x64] ss:$24 sps:$4 sm:$0xff]   ;;  %v2775_v6 = vld [vmem:[#allocation5 + $0x60] ss:$24 sps:$4 sm:$0xff]   ;;  %v2776_v7 = vld [vmem:[#allocation5 + $0x94] ss:$24 sps:$4 sm:$0xff]  }
  0xab   : > { %838 = vmatpush1.bf16.msra.mxu0 %v2769_v2  ;;  %v2778_v8 = vld [vmem:[#allocation5 + $0x90] ss:$24 sps:$4 sm:$0xff]   ;;  %v2779_v9 = vld [vmem:[#allocation5 + $0xc4] ss:$24 sps:$4 sm:$0xff]   ;;  %v2781_v13 = vld [vmem:[#allocation5 + $0xc0] ss:$24 sps:$4 sm:$0xff]  }
  0xac   : > { %839 = vmatprep.subr.bf16.mxu0 %v2770_v3  ;;  %v2791_v10 = vld [vmem:[#allocation5 + $0xc] ss:$24 sps:$4 sm:$0xff]   ;;  %v2793_v11 = vld [vmem:[#allocation5 + $0x8] ss:$24 sps:$4 sm:$0xff]   ;;  %v2794_v12 = vld [vmem:[#allocation5 + $0x3c] ss:$24 sps:$4 sm:$0xff]  }
  0xad   : > { %878 = vmatprep.subr.bf16.mxu1 %v2791_v10  ;;  %v2796_v14 = vld [vmem:[#allocation5 + $0x38] ss:$24 sps:$4 sm:$0xff]   ;;  %v2797_v15 = vld [vmem:[#allocation5 + $0x6c] ss:$24 sps:$4 sm:$0xff]   ;;  %v2799_v18 = vld [vmem:[#allocation5 + $0x68] ss:$24 sps:$4 sm:$0xff]  }
  0xae   : > { %879 = vmatpush1.bf16.msra.mxu1 %v2793_v11  ;;  %v2782_v16 = vld [vmem:[#allocation5 + $0xf4] ss:$24 sps:$4 sm:$0xff]   ;;  %v2784_v17 = vld [vmem:[#allocation5 + $0xf0] ss:$24 sps:$4 sm:$0xff]   ;;  %v2785_v20 = vld [vmem:[#allocation5 + $0x124] ss:$24 sps:$4 sm:$0xff]  }
  0xaf   : > { %840 = vmatpush1.bf16.msra.mxu0 %v2772_v4  ;;  %880 = vmatprep.subr.bf16.mxu1 %v2794_v12  ;;  %v2800_v19 = vld [vmem:[#allocation5 + $0x9c] ss:$24 sps:$4 sm:$0xff]   ;;  %v2787_v21 = vld [vmem:[#allocation5 + $0x120] ss:$24 sps:$4 sm:$0xff]   ;;  %v2803_v23 = vld [vmem:[#allocation5 + $0xcc] ss:$24 sps:$4 sm:$0xff]  }
  0xb0   : > { %841 = vmatprep.subr.bf16.mxu0 %v2773_v5  ;;  %v2802_v22 = vld [vmem:[#allocation5 + $0x98] ss:$24 sps:$4 sm:$0xff]   ;;  %v2788_v24 = vld [vmem:[#allocation5 + $0x154] ss:$24 sps:$4 sm:$0xff]   ;;  %v2805_v25 = vld [vmem:[#allocation5 + $0xc8] ss:$24 sps:$4 sm:$0xff]  }
  0xb1   : > { %v2790_v26 = vld [vmem:[#allocation5 + $0x150] ss:$24 sps:$4 sm:$0xff]   ;;  %v2806_v28 = vld [vmem:[#allocation5 + $0xfc] ss:$24 sps:$4 sm:$0xff]   ;;  %v2809_v30 = vld [vmem:[#allocation5 + $0x12c] ss:$24 sps:$4 sm:$0xff]  }
  0xb2   : > { %881 = vmatpush1.bf16.msra.mxu1 %v2796_v14  ;;  %v3460_v27 = vld [vmem:[%s3443_s20] sm:$0xff]  ;;  %v2811_v32 = vld [vmem:[#allocation5 + $0x128] ss:$24 sps:$4 sm:$0xff]   ;;  %vm3144_vm0 = vmmov 0   ;;  %v3473_v37 = vshrl.u32 %v567_v36, 7  ;;  %vm1023_vm1 = vcmask 1043456  }
  0xb3   : > { %842 = vmatpush1.bf16.msra.mxu0 %v2775_v6  ;;  %882 = vmatprep.subr.bf16.mxu1 %v2797_v15  ;;  %v2808_v29 = vld [vmem:[#allocation5 + $0xf8] ss:$24 sps:$4 sm:$0xff]   ;;  %v3464_v31 = vpack.c.bf16 %v3460_v27, %v3460_v27  ;;  %v2812_v33 = vld [vmem:[#allocation5 + $0x15c] ss:$24 sps:$4 sm:$0xff]   ;;  %vm1007_vm2 = vcmask 64512   ;;  %vm1427_vm4 = vcmask 1040384  }
  0xb4   : > { %843 = vmatprep.subr.bf16.mxu0 %v2776_v7  ;;  %v2814_v34 = vld [vmem:[#allocation5 + $0x158] ss:$24 sps:$4 sm:$0xff]   ;;  %v573_v38 = vsub.s32 1, %v3473_v37  ;;  %v569_v41 = vsub.s32 0, %v3473_v37  ;;  %v577_v49 = vsub.s32 2, %v3473_v37  ;;  %vm1431_vm6 = vcmask 1044480  }
  0xb5   : > { %v3479_v39 = vld [vmem:[%s3698_s2] sm:$0x3f]  ;;  %v2820_v62 = vld [vmem:[#allocation5 + $0x44] ss:$24 sps:$4 sm:$0xff]   ;;  %v2818_v63 = vld [vmem:[#allocation5 + $0x40] ss:$24 sps:$4 sm:$0xff]  }
  0xb6   : > { %883 = vmatpush1.bf16.msra.mxu1 %v2799_v18  ;;  %v574_v40 = vrot.slane %v3479_v39, %v573_v38  ;;  %v570_v46 = vrot.slane %v3479_v39, %v569_v41  ;;  %v578_v51 = vrot.slane %v3479_v39, %v577_v49  ;;  %v2815_v60 = vld [vmem:[#allocation5 + $0x10] ss:$24 sps:$4 sm:$0xff]   ;;  %v2817_v61 = vld [vmem:[#allocation5 + $0x14] ss:$24 sps:$4 sm:$0xff]   ;;  %v2826_v2 = vld [vmem:[#allocation5 + $0xa4] ss:$24 sps:$4 sm:$0xff]  }
  0xb7   : > { %844 = vmatpush1.bf16.msra.mxu0 %v2778_v8  ;;  %884 = vmatprep.subr.bf16.mxu1 %v2800_v19  ;;  %v2821_v1 = vld [vmem:[#allocation5 + $0x70] ss:$24 sps:$4 sm:$0xff]   ;;  %v2824_v3 = vld [vmem:[#allocation5 + $0xa0] ss:$24 sps:$4 sm:$0xff]   ;;  %v2829_v4 = vld [vmem:[#allocation5 + $0xd4] ss:$24 sps:$4 sm:$0xff]  }
  0xb8   : > { %845 = vmatprep.subr.bf16.mxu0 %v2779_v9  ;;  %v2827_v5 = vld [vmem:[#allocation5 + $0xd0] ss:$24 sps:$4 sm:$0xff]   ;;  %v2832_v6 = vld [vmem:[#allocation5 + $0x104] ss:$24 sps:$4 sm:$0xff]   ;;  %v2830_v7 = vld [vmem:[#allocation5 + $0x100] ss:$24 sps:$4 sm:$0xff]  }
  0xb9   : > { %v2835_v8 = vld [vmem:[#allocation5 + $0x134] ss:$24 sps:$4 sm:$0xff]   ;;  %v2833_v9 = vld [vmem:[#allocation5 + $0x130] ss:$24 sps:$4 sm:$0xff]   ;;  %v2838_v10 = vld [vmem:[#allocation5 + $0x164] ss:$24 sps:$4 sm:$0xff]  }
  0xba   : > { %885 = vmatpush1.bf16.msra.mxu1 %v2802_v22  ;;  %v2836_v11 = vld [vmem:[#allocation5 + $0x160] ss:$24 sps:$4 sm:$0xff]   ;;  %vm1428_vm5 = vsmask.f32 256  ;;  %vm1432_vm7 = vsmask.f32 4352 }
  0xbb   : > { %846 = vmatpush1.bf16.msra.mxu0 %v2781_v13  ;;  %886 = vmatprep.subr.bf16.mxu1 %v2803_v23  ;;  %vm3578_vm8 = vmand %vm1427_vm4, %vm1428_vm5  ;;  %s3741_s29 = sld [smem:[#allocation18_spill]]  ;;  %s3742_s10 = sld [smem:[#allocation19_spill]] }
  0xbc   : > { %847 = vmatprep.subr.bf16.mxu0 %v2782_v16  ;;  %vm3582_vm9 = vmand %vm1431_vm6, %vm1432_vm7  ;;  %s3743_s12 = sld [smem:[#allocation20_spill]]  ;;  %s3744_s11 = sld [smem:[#allocation21_spill]] }
  0xbd   : > { %s2406_s19 = sshll.u32 %s3237_s14, 7  ;;  %s513_s21 = scalar_lea.vmem [#allocation11], %s2277_s30 }
  0xbe   : > { %887 = vmatpush1.bf16.msra.mxu1 %v2805_v25  ;;  %s2146_s18 = scalar_lea.sflag [#allocation4], %s3437_s1  ;;  %p3746_p0 = scmp.ne.s32.totalorder %s3728_s22, 0 }
  0xbf   : > { %848 = vmatpush1.bf16.msra.mxu0 %v2784_v17  ;;  %888 = vmatprep.subr.bf16.mxu1 %v2806_v28  ;;  %s3145_s14 = smov [#allocation11]  }
  0xc0   : > { %849 = vmatprep.subr.bf16.mxu0 %v2785_v20  ;;  %s3061_s30 = sshll.u32 %s3145_s14, 4  ;;  %s3062_s30 = int_to_ptr.vmem [resolvable:$false] %s3061_s30 }
  0xc2   : > { %889 = vmatpush1.bf16.msra.mxu1 %v2808_v29  ;;  %v585_v29 = vsub.s32 4, %v3473_v37 }
  0xc3   : > { %850 = vmatpush1.bf16.msra.mxu0 %v2787_v21  ;;  %890 = vmatprep.subr.bf16.mxu1 %v2809_v30 }
  0xc4   : > { %851 = vmatprep.subr.bf16.mxu0 %v2788_v24  ;;  %v586_v30 = vrot.slane %v3479_v39, %v585_v29 }
  0xc6   : > { %891 = vmatpush1.bf16.msra.mxu1 %v2811_v32 }
  0xc7   : > { %852 = vmatpush1.bf16.msra.mxu0 %v2790_v26  ;;  %892 = vmatprep.subr.bf16.mxu1 %v2812_v33  ;;  %v581_v33 = vsub.s32 3, %v3473_v37 }
  0xc8   : > { %919 = vmatprep.subr.bf16.mxu0 %v2817_v61 }
  0xca   : > { %870 = vmatmul.mubr.bf16.vlgmr.msra.gmra.mrb[0].mxu0 %v3464_v31  ;;  %893 = vmatpush1.bf16.msra.mxu1 %v2814_v34 }
  0xcb   : > { %951 = vmatprep.mubr.bf16.mxu0 %v3142_v0  ;;  %2489 = vmatprep.subr.bf16.mxu1 %v3143_v35  ;;  %v2823_v0 = vld [vmem:[#allocation5 + $0x74] ss:$24 sps:$4 sm:$0xff]  }
  0xcc   : > { %920 = vmatpush1.bf16.msra.mxu0 %v2815_v60 }
  0xcd   : > { %911 = vmatmul.mubr.bf16.vlgmr.msra.gmra.mrb[0].mxu1 %v3464_v31  ;;  %921 = vmatprep.subr.bf16.mxu0 %v2820_v62  ;;  %v2847_v62 = vld [vmem:[#allocation7 + $0x40] sm:$0xff]  }
  0xce   : > { %2491 = vmatprep.mubr.msk.bf16.mxu1 %vm3144_vm0, %v3143_v35 }
  0xd0   : > { %922 = vmatpush1.bf16.msra.mxu0 %v2818_v63  ;;  %v2848_v63 = vld [vmem:[#allocation7 + $0x48] sm:$0xff]  }
  0xd1   : > { %923 = vmatprep.subr.bf16.mxu0 %v2823_v0  ;;  %v2849_v0 = vld [vmem:[#allocation7 + $0x50] sm:$0xff]  }
  0xd4   : > { %924 = vmatpush1.bf16.msra.mxu0 %v2821_v1  ;;  %v2850_v1 = vld [vmem:[#allocation7 + $0x58] sm:$0xff]  }
  0xd5   : > { %925 = vmatprep.subr.bf16.mxu0 %v2826_v2  ;;  %v2851_v2 = vld [vmem:[#allocation7 + $0x60] sm:$0xff]  }
  0xd8   : > { %926 = vmatpush1.bf16.msra.mxu0 %v2824_v3  ;;  %v2852_v3 = vld [vmem:[#allocation7 + $0x68] sm:$0xff]  }
  0xd9   : > { %927 = vmatprep.subr.bf16.mxu0 %v2829_v4  ;;  %v2853_v4 = vld [vmem:[#allocation7 + $0x70] sm:$0xff]  }
  0xdc   : > { %928 = vmatpush1.bf16.msra.mxu0 %v2827_v5 }
  0xdd   : > { %929 = vmatprep.subr.bf16.mxu0 %v2832_v6 }
  0xe0   : > { %930 = vmatpush1.bf16.msra.mxu0 %v2830_v7 }
  0xe1   : > { %931 = vmatprep.subr.bf16.mxu0 %v2835_v8  ;;  %v2839_v8 = vld [vmem:[#allocation7] sm:$0xff]  }
  0xe4   : > { %932 = vmatpush1.bf16.msra.mxu0 %v2833_v9 }
  0xe5   : > { %933 = vmatprep.subr.bf16.mxu0 %v2838_v10  ;;  %v2840_v10 = vld [vmem:[#allocation7 + $0x8] sm:$0xff]  }
  0xe8   : > { %934 = vmatpush1.bf16.msra.mxu0 %v2836_v11  ;;  %v2841_v11 = vld [vmem:[#allocation7 + $0x10] sm:$0xff]  }
  0xe9   : > { %2513 = vmatprep.subr.bf16.mxu0 %v3143_v35 }
  0xeb   : > { %952 = vmatmul.mubr.bf16.vlgmr.msra.gmra.mrb[4].mxu0 %v3464_v31  ;;  %v589_v31 = vsub.s32 5, %v3473_v37 }
  0xec   : > { %2529 = vmatprep.mubr.msk.bf16.mxu0 %vm3144_vm0, %v3143_v35  ;;  %2514 = vmatpush3.bf16.msra.mxu0 %v2847_v62 }
  0xed   : > { %2515 = vmatprep.subr.bf16.mxu0 %v3143_v35 }
  0xf0   : > { %2516 = vmatpush3.bf16.msra.mxu0 %v2848_v63 }
  0xf1   : > { %2517 = vmatprep.subr.bf16.mxu0 %v3143_v35 }
  0xf4   : > { %2518 = vmatpush3.bf16.msra.mxu0 %v2849_v0  ;;  %v2351_v0 = vld [vmem:[%s3701_s5] ss:$0 sm:$0xff] }
  0xf5   : > { %2519 = vmatprep.subr.bf16.mxu0 %v3143_v35 }
  0xf8   : > { %2520 = vmatpush3.bf16.msra.mxu0 %v2850_v1 }
  0xf9   : > { %2521 = vmatprep.subr.bf16.mxu0 %v3143_v35 }
  0xfc   : > { %2522 = vmatpush3.bf16.msra.mxu0 %v2851_v2  ;;  %v2352_v2 = vld [vmem:[%s3702_s6] ss:$0 sm:$0xff] }
  0xfd   : > { %2523 = vmatprep.subr.bf16.mxu0 %v3143_v35 }
 0x100   : > { %2524 = vmatpush3.bf16.msra.mxu0 %v2852_v3 }
 0x101   : > { %2525 = vmatprep.subr.bf16.mxu0 %v3143_v35 }
 0x104   : > { %2526 = vmatpush3.bf16.msra.mxu0 %v2853_v4 }
 0x105   : > { %2527 = vmatprep.subr.bf16.mxu0 %v3143_v35 }
 0x19d   : > { %v871_v42 = vpop.f32.mrb[0].mxu0 }
 0x19e   : > { %v873_v43 = vpop.f32.mrb[1].mxu0  ;;  %v872_v50 = vadd.f32 %v871_v42, %v570_v46  ;;  %v582_v42 = vrot.slane %v3479_v39, %v581_v33 }
 0x19f   : > { %v874_v44 = vadd.f32 %v873_v43, %v574_v40  ;;  %v875_v45 = vpop.f32.mrb[2].mxu0  ;;  %v590_v40 = vrot.slane %v3479_v39, %v589_v31 }
 0x1a0   : > { %v876_v47 = vpop.f32.mrb[3].mxu0  ;;  %v960_v52 = vpack.c.bf16 %v872_v50, %v872_v50  ;;  %v912_v53 = vpop.f32.mrb[0].mxu1 }
 0x1a1   : > { %v961_v48 = vpack.c.bf16 %v874_v44, %v874_v44  ;;  %v913_v54 = vadd.f32 %v912_v53, %v578_v51  ;;  %v3487_v55 = vpop.f32.mrb[1].mxu1 }
 0x1a2   : > { %v916_v56 = vpop.f32.mrb[2].mxu1  ;;  %v915_v45 = vadd.f32 %v3487_v55, %v582_v42 }
 0x1a3   : > { %2490 = vmatpush3.bf16.xpose.msra.mxu1 %v961_v48  ;;  %v962_v57 = vpack.c.bf16 %v913_v54, %v913_v54  ;;  %v917_v58 = vpop.f32.mrb[3].mxu1 }
 0x1a4   : > { %2495 = vmatprep.subr.bf16.mxu1 %v3143_v35  ;;  %v963_v46 = vpack.c.bf16 %v915_v45, %v915_v45 }
 0x1a5   : > { %v1025_v59 = vsel %vm1023_vm1, %v962_v57, 0 }
 0x1aa   : > { %2492 = vmatmul.mubr.bf16.vlgmr.msra.gmra.mrb[4].mxu1 %v960_v52 }
 0x1ab   : > { %2497 = vmatprep.mubr.msk.bf16.mxu1 %vm3144_vm0, %v3143_v35  ;;  %2496 = vmatpush3.bf16.msra.mxu1 %v1025_v59 }
 0x1ac   : > { %2501 = vmatprep.subr.bf16.mxu1 %v3143_v35 }
 0x1be   : > { %v953_v23 = vpop.f32.mrb[4].mxu0 }
 0x1bf   : > { %v955_v24 = vpop.f32.mrb[5].mxu0  ;;  %v954_v32 = vadd.f32 %v953_v23, %v586_v30  ;;  %v2349_v30 = vld [vmem:[%s3700_s4] ss:$0 sm:$0xff] }
 0x1c0   : > { %v957_v25 = vpop.f32.mrb[6].mxu0  ;;  %v956_v44 = vadd.f32 %v955_v24, %v590_v40  ;;  %v1387_v40 = vand.u32 127, %v567_v36  ;;  %v2858_v36 = vld [vmem:[#allocation8 + $0x10] sm:$0xff]  }
 0x1c1   : > { %v958_v26 = vpop.f32.mrb[7].mxu0  ;;  %v964_v41 = vpack.c.bf16 %v954_v32, %v954_v32 }
 0x1c2   : > { %v965_v37 = vpack.c.bf16 %v956_v44, %v956_v44  ;;  %vm1388_vm3 = vcmp.lt.s32.totalorder %v1387_v40, 32  ;;  %v2887_v40 = vld [vmem:[#allocation10 + $0x58] sm:$0xff]  }
 0x1c4   : > { %v1141_v47 = vsel %vm1023_vm1, %v965_v37, 0 }
 0x27d   : > { %v1000_v12 = vpop.f32.mrb[4].mxu1 }
 0x27e   : > { %v1006_v13 = vmul.f32 0.17677669, %v1000_v12  ;;  %v2493_v14 = vpop.f32.mrb[5].mxu1  ;;  %v2842_v12 = vld [vmem:[#allocation7 + $0x18] sm:$0xff]  }
 0x27f   : > { %v1003_v15 = vpop.f32.mrb[6].mxu1  ;;  %v2844_v14 = vld [vmem:[#allocation7 + $0x28] sm:$0xff]  }
 0x280   : > { %v2494_v16 = vpop.f32.mrb[7].mxu1  ;;  %v1008_v17 = vsel %vm1007_vm2, %v1006_v13, -inf  ;;  %v2845_v15 = vld [vmem:[#allocation7 + $0x30] sm:$0xff]  }
 0x281   : > { %1009 = vmax.xlane.f32.xlu0 %v1008_v17  ;;  %v2846_v16 = vld [vmem:[#allocation7 + $0x38] sm:$0xff]  }
 0x30e   : > { %v1010_v18 = vpop.xlane.xlu0 %1009 }
 0x30f   : > { %v1011_v19 = vsub.f32 %v1006_v13, %v1010_v18  ;;  %v2843_v13 = vld [vmem:[#allocation7 + $0x20] sm:$0xff]   ;;  %v2854_v18 = vld [vmem:[#allocation7 + $0x78] sm:$0xff]  }
 0x310   : > { %2528 = vmatpush3.bf16.msra.mxu0 %v2854_v18 }
 0x311   : > { %v1012_v20 = vmul.f32 1.442695, %v1011_v19  ;;  %2553 = vmatprep.subr.bf16.mxu0 %v3143_v35 }
 0x313   : > { %2903 = vpow2.f32 %v1012_v20 }
 0x31d   : > { %v2904_v21 = vpop.eup %2903 }
 0x31e   : > { %v1014_v22 = vsel %vm1007_vm2, %v2904_v21, 0.0 }
 0x31f   : > { %1015 = vadd.xlane.f32.xlu0 %v1014_v22 }
 0x3ac   : > { %v1016_v28 = vpop.xlane.xlu0 %1015 }
 0x3ad   : > { %2905 = vrcp.f32 %v1016_v28 }
 0x3b7   : > { %v2906_v34 = vpop.eup %2905 }
 0x3b8   : > { %v1018_v38 = vmul.f32 %v2906_v34, %v2904_v21 }
 0x3ba   : > { %v1019_v43 = vpack.c.bf16 %v1018_v38, %v1018_v38 }
 0x3bc   : > { %2498 = vmatmul.mubr.msk.bf16.vlgmr.msra.gmra.mrb[8].mxu1 %vm1007_vm2, %v1019_v43  ;;  %v3548_v43 = vsel %vm1388_vm3, 1.0, %v3143_v35 }
 0x3bd   : > { %2502 = vmatpush3.bf16.xpose.msra.mxu1 %v964_v41  ;;  %2503 = vmatprep.mubr.msk.bf16.mxu1 %vm3144_vm0, %v3143_v35 }
 0x3be   : > { %2507 = vmatprep.subr.bf16.mxu1 %v3143_v35 }
 0x3c4   : > { %2504 = vmatmul.mubr.bf16.vlgmr.msra.gmra.mrb[12].mxu1 %v963_v46  ;;  %v2855_v46 = vld [vmem:[#allocation8] sm:$0xff]  }
 0x3c5   : > { %2508 = vmatpush3.bf16.msra.mxu1 %v1141_v47  ;;  %2509 = vmatprep.mubr.msk.bf16.mxu1 %vm3144_vm0, %v3143_v35  ;;  %v2856_v47 = vld [vmem:[#allocation8 + $0x8] sm:$0xff]  }
 0x3c6   : > { %2533 = vmatprep.subr.bf16.mxu1 %v3143_v35 }
 0x48f   : > { %v3514_v39 = vpop.f32.mrb[8].mxu1 }
 0x490   : > { %v2499_v48 = vpop.f32.mrb[9].mxu1  ;;  %v1067_v17 = vpack.c.bf16 %v3514_v39, %v3514_v39  ;;  %v2857_v39 = vld [vmem:[#allocation8 + $0x40] sm:$0xff]  }
 0x491   : > { %v1064_v49 = vpop.f32.mrb[10].mxu1  ;;  %v2859_v48 = vld [vmem:[#allocation8 + $0x48] sm:$0xff]  }
 0x492   : > { %v2500_v50 = vpop.f32.mrb[11].mxu1  ;;  %v2860_v49 = vld [vmem:[#allocation8 + $0x18] sm:$0xff]  }
 0x493   : > { %v2861_v50 = vld [vmem:[#allocation8 + $0x50] sm:$0xff]  }
 0x497   : > { %v1118_v51 = vpop.f32.mrb[12].mxu1 }
 0x498   : > { %v1124_v52 = vmul.f32 0.17677669, %v1118_v51  ;;  %v2505_v53 = vpop.f32.mrb[13].mxu1  ;;  %v2862_v51 = vld [vmem:[#allocation8 + $0x20] sm:$0xff]  }
 0x499   : > { %v1121_v54 = vpop.f32.mrb[14].mxu1  ;;  %v2864_v53 = vld [vmem:[#allocation8 + $0x28] sm:$0xff]  }
 0x49a   : > { %v2506_v55 = vpop.f32.mrb[15].mxu1  ;;  %v1125_v56 = vsel %vm1007_vm2, %v1124_v52, -inf  ;;  %v2865_v54 = vld [vmem:[#allocation8 + $0x60] sm:$0xff]  }
 0x49b   : > { %1126 = vmax.xlane.f32.xlu1 %v1125_v56  ;;  %v2866_v55 = vld [vmem:[#allocation8 + $0x30] sm:$0xff]   ;;  %v2867_v56 = vld [vmem:[#allocation8 + $0x68] sm:$0xff]  }
 0x528   : > { %v1127_v57 = vpop.xlane.xlu1 %1126 }
 0x529   : > { %v1128_v58 = vsub.f32 %v1124_v52, %v1127_v57  ;;  %v2863_v52 = vld [vmem:[#allocation8 + $0x58] sm:$0xff]  }
 0x52a   : > { %v2868_v57 = vld [vmem:[#allocation8 + $0x38] sm:$0xff]  }
 0x52b   : > { %v1129_v59 = vmul.f32 1.442695, %v1128_v58  ;;  %v2869_v58 = vld [vmem:[#allocation8 + $0x70] sm:$0xff]  }
 0x52d   : > { %2907 = vpow2.f32 %v1129_v59  ;;  %v2870_v59 = vld [vmem:[#allocation8 + $0x78] sm:$0xff]  }
 0x537   : > { %v2908_v60 = vpop.eup %2907 }
 0x538   : > { %v1131_v61 = vsel %vm1007_vm2, %v2908_v60, 0.0 }
 0x539   : > { %1132 = vadd.xlane.f32.xlu1 %v1131_v61 }
 0x5c6   : > { %v1133_v5 = vpop.xlane.xlu1 %1132 }
 0x5c7   : > { %2909 = vrcp.f32 %v1133_v5 }
 0x5d1   : > { %v2910_v6 = vpop.eup %2909 }
 0x5d2   : > { %v1135_v7 = vmul.f32 %v2910_v6, %v2908_v60 }
 0x5d4   : > { %v1136_v9 = vpack.c.bf16 %v1135_v7, %v1135_v7 }
 0x5d6   : > { %2510 = vmatmul.mubr.msk.bf16.vlgmr.msra.gmra.mrb[16].mxu1 %vm1007_vm2, %v1136_v9 }
 0x5d7   : > { %2534 = vmatpush3.bf16.msra.mxu1 %v2839_v8  ;;  %2549 = vmatprep.mubr.msk.bf16.mxu1 %vm3144_vm0, %v3143_v35 }
 0x5d8   : > { %2535 = vmatprep.subr.bf16.mxu1 %v3143_v35 }
 0x5db   : > { %2536 = vmatpush3.bf16.msra.mxu1 %v2840_v10  ;;  %v2897_v10 = vld [vmem:[#allocation10 + $0x90] sm:$0xff]  }
 0x5dc   : > { %2537 = vmatprep.subr.bf16.mxu1 %v3143_v35 }
 0x5df   : > { %2538 = vmatpush3.bf16.msra.mxu1 %v2841_v11 }
 0x5e0   : > { %2539 = vmatprep.subr.bf16.mxu1 %v3143_v35 }
 0x5e3   : > { %2540 = vmatpush3.bf16.msra.mxu1 %v2842_v12  ;;  %v2898_v12 = vld [vmem:[#allocation10 + $0x98] sm:$0xff]  }
 0x5e4   : > { %2541 = vmatprep.subr.bf16.mxu1 %v3143_v35 }
 0x5e7   : > { %2542 = vmatpush3.bf16.msra.mxu1 %v2843_v13 }
 0x5e8   : > { %2543 = vmatprep.subr.bf16.mxu1 %v3143_v35 }
 0x5eb   : > { %2544 = vmatpush3.bf16.msra.mxu1 %v2844_v14 }
 0x5ec   : > { %2545 = vmatprep.subr.bf16.mxu1 %v3143_v35 }
 0x5ef   : > { %2546 = vmatpush3.bf16.msra.mxu1 %v2845_v15 }
 0x5f0   : > { %2547 = vmatprep.subr.bf16.mxu1 %v3143_v35 }
 0x5f3   : > { %2548 = vmatpush3.bf16.msra.mxu1 %v2846_v16 }
 0x5f4   : > { %2573 = vmatprep.subr.bf16.mxu1 %v3143_v35 }
 0x5f6   : > { %2550 = vmatmul.mubr.bf16.vlgmr.msra.gmra.mrb[20].mxu1 %v1067_v17  ;;  %v2871_v17 = vld [vmem:[#allocation8 + $0x80] sm:$0xff]  }
 0x5f7   : > { %2589 = vmatprep.mubr.msk.bf16.mxu1 %vm3144_vm0, %v3143_v35  ;;  %2574 = vmatpush3.bf16.msra.mxu1 %v2855_v46  ;;  %v2893_v46 = vld [vmem:[#allocation10 + $0x70] sm:$0xff]  }
 0x5f8   : > { %2575 = vmatprep.subr.bf16.mxu1 %v3143_v35 }
 0x5fb   : > { %2576 = vmatpush3.bf16.msra.mxu1 %v2856_v47  ;;  %v2894_v47 = vld [vmem:[#allocation10 + $0x78] sm:$0xff]  }
 0x5fc   : > { %2577 = vmatprep.subr.bf16.mxu1 %v3143_v35 }
 0x5ff   : > { %2578 = vmatpush3.bf16.msra.mxu1 %v2858_v36 }
 0x600   : > { %2579 = vmatprep.subr.bf16.mxu1 %v3143_v35 }
 0x603   : > { %2580 = vmatpush3.bf16.msra.mxu1 %v2860_v49 }
 0x604   : > { %2581 = vmatprep.subr.bf16.mxu1 %v3143_v35 }
 0x607   : > { %2582 = vmatpush3.bf16.msra.mxu1 %v2862_v51 }
 0x608   : > { %2583 = vmatprep.subr.bf16.mxu1 %v3143_v35 }
 0x60b   : > { %2584 = vmatpush3.bf16.msra.mxu1 %v2864_v53 }
 0x60c   : > { %2585 = vmatprep.subr.bf16.mxu1 %v3143_v35 }
 0x60f   : > { %2586 = vmatpush3.bf16.msra.mxu1 %v2866_v55 }
 0x610   : > { %2587 = vmatprep.subr.bf16.mxu1 %v3143_v35 }
 0x613   : > { %2588 = vmatpush3.bf16.msra.mxu1 %v2868_v57 }
 0x614   : > { %2613 = vmatprep.subr.bf16.mxu1 %v3143_v35 }
 0x6a9   : > { %v1177_v19 = vpop.f32.mrb[16].mxu1 }
 0x6aa   : > { %v1183_v20 = vpack.c.bf16 %v1177_v19, %v1177_v19  ;;  %v2511_v21 = vpop.f32.mrb[17].mxu1  ;;  %v2872_v19 = vld [vmem:[#allocation8 + $0x88] sm:$0xff]  }
 0x6ab   : > { %v1180_v22 = vpop.f32.mrb[18].mxu1  ;;  %v2874_v21 = vld [vmem:[#allocation8 + $0x98] sm:$0xff]  }
 0x6ac   : > { %v2512_v23 = vpop.f32.mrb[19].mxu1  ;;  %2530 = vmatmul.mubr.bf16.vlgmr.msra.gmra.mrb[8].mxu0 %v1183_v20  ;;  %v2873_v20 = vld [vmem:[#allocation8 + $0x90] sm:$0xff]   ;;  %v2875_v22 = vld [vmem:[#allocation8 + $0xa0] sm:$0xff]  }
 0x6ad   : > { %2569 = vmatprep.mubr.msk.bf16.mxu0 %vm3144_vm0, %v3143_v35  ;;  %2554 = vmatpush3.bf16.msra.mxu0 %v2857_v39  ;;  %v2876_v23 = vld [vmem:[#allocation8 + $0xa8] sm:$0xff]  }
 0x6ae   : > { %2555 = vmatprep.subr.bf16.mxu0 %v3143_v35 }
 0x6b1   : > { %2556 = vmatpush3.bf16.msra.mxu0 %v2859_v48 }
 0x6b2   : > { %2557 = vmatprep.subr.bf16.mxu0 %v3143_v35 }
 0x6b5   : > { %2558 = vmatpush3.bf16.msra.mxu0 %v2861_v50 }
 0x6b6   : > { %2559 = vmatprep.subr.bf16.mxu0 %v3143_v35 }
 0x6b9   : > { %2560 = vmatpush3.bf16.msra.mxu0 %v2863_v52 }
 0x6ba   : > { %2561 = vmatprep.subr.bf16.mxu0 %v3143_v35 }
 0x6bd   : > { %2562 = vmatpush3.bf16.msra.mxu0 %v2865_v54 }
 0x6be   : > { %2563 = vmatprep.subr.bf16.mxu0 %v3143_v35 }
 0x6c1   : > { %2564 = vmatpush3.bf16.msra.mxu0 %v2867_v56  ;;  %v2377_v56 = vld [vmem:[%s3741_s29] ss:$0 sm:$0xff]  ;;  %s2159_s29 = sshll.u32 %s513_s21, 4  ;;  %s3654_s29 = int_to_ptr.vmem [resolvable:$true] %s2159_s29 }
 0x6c2   : > { %2565 = vmatprep.subr.bf16.mxu0 %v3143_v35  ;;  %s3057_s13 = scalar_lea.vmem %s3654_s29, 128  ;;  %p3064_p10 = scmp.lt.s32.totalorder %s3654_s29, %s3062_s30 }
 0x6c3   : > { %p3058_p6 = scmp.ne.s32.totalorder %s3654_s29, %s3057_s13 }
 0x6c5   : > { %2566 = vmatpush3.bf16.msra.mxu0 %v2869_v58  ;;  %p3059_p2 = pnand %p3058_p6, %p3746_p0 }
 0x6c6   : > { %2567 = vmatprep.subr.bf16.mxu0 %v3143_v35 }
 0x6c7   : > { %p3060_p5 = pneg %p3059_p2 }
 0x6c9   : > { %v1370_v24 = vpop.f32.mrb[20].mxu1  ;;  %2568 = vmatpush3.bf16.msra.mxu0 %v2870_v59 }
 0x6ca   : > { %v2551_v25 = vpop.f32.mrb[21].mxu1  ;;  %2593 = vmatprep.subr.bf16.mxu0 %v3143_v35 }
 0x6cb   : > { %v1373_v26 = vpop.f32.mrb[22].mxu1  ;;  %v2878_v25 = vld [vmem:[#allocation8 + $0xb8] sm:$0xff]  }
 0x6cc   : > { %v2552_v28 = vpop.f32.mrb[23].mxu1 }
 0x6cd   : > { %v2879_v28 = vld [vmem:[#allocation10] sm:$0xff]  }
 0x77f   : > { %v1282_v29 = vpop.f32.mrb[8].mxu0 }
 0x780   : > { %v1371_v31 = vadd.f32 %v1370_v24, %v1282_v29  ;;  %v2531_v32 = vpop.f32.mrb[9].mxu0  ;;  %v2877_v24 = vld [vmem:[#allocation8 + $0xb0] sm:$0xff]   ;;  %v2881_v29 = vld [vmem:[#allocation10 + $0x40] sm:$0xff]  }
 0x781   : > { %v1285_v33 = vpop.f32.mrb[10].mxu0  ;;  %v2882_v32 = vld [vmem:[#allocation10 + $0x10] sm:$0xff]  }
 0x782   : > { %v2532_v34 = vpop.f32.mrb[11].mxu0  ;;  %v1383_v38 = vadd.f32 %v2349_v30, %v1371_v31  ;;  %v2880_v30 = vld [vmem:[#allocation10 + $0x8] sm:$0xff]   ;;  %v2885_v33 = vld [vmem:[#allocation10 + $0x50] sm:$0xff]  }
 0x783   : > { %v2883_v31 = vld [vmem:[#allocation10 + $0x48] sm:$0xff]   ;;  %v2884_v34 = vld [vmem:[#allocation10 + $0x18] sm:$0xff]  }
 0x784   : > { %1391 = vadd.xlane.f32.xlu0 %v1383_v38 }
 0x811   : > { %v1392_v41 = vpop.xlane.xlu0 %1391 }
 0x812   : > { %v1393_v42 = vmul.f32 0.03125, %v1392_v41  ;;  %v2888_v41 = vld [vmem:[#allocation10 + $0x28] sm:$0xff]  }
 0x814   : > { %v1394_v44 = vsub.f32 %v1383_v38, %v1393_v42  ;;  %v2886_v38 = vld [vmem:[#allocation10 + $0x20] sm:$0xff]  }
 0x815   : > { %v2889_v42 = vld [vmem:[#allocation10 + $0x60] sm:$0xff]  }
 0x816   : > { %v1395_v45 = vmul.f32 %v3548_v43, %v1394_v44  ;;  %v2890_v44 = vld [vmem:[#allocation10 + $0x30] sm:$0xff]  }
 0x818   : > { %v1396_v37 = vmul.f32 %v1395_v45, %v1395_v45 }
 0x81a   : > { %1397 = vadd.xlane.f32.xlu1 %v1396_v37  ;;  %v2892_v37 = vld [vmem:[#allocation10 + $0x38] sm:$0xff]  }
 0x8a7   : > { %v1398_v60 = vpop.xlane.xlu1 %1397 }
 0x8a8   : > { %v1399_v61 = vmul.f32 0.03125, %v1398_v60 }
 0x8aa   : > { %v1400_v62 = vadd.f32 1e-05, %v1399_v61 }
 0x8ac   : > { %2911 = vrsqrt.f32 %v1400_v62 }
 0x8b6   : > { %v2912_v63 = vpop.eup %2911 }
 0x8b7   : > { %v1402_v1 = vmul.f32 %v2912_v63, %v1395_v45  ;;  %v2891_v45 = vld [vmem:[#allocation10 + $0x68] sm:$0xff]  }
 0x8b9   : > { %v1409_v3 = vmul.f32 %v2351_v0, %v1402_v1 }
 0x8bb   : > { %v1416_v4 = vadd.f32 %v2352_v2, %v1409_v3 }
 0x8bd   : > { %v3574_v5 = vadd.f32 %v1416_v4, %v3460_v27 }
 0x8bf   : > { %v1418_v6 = vpack.c.bf16 %v3574_v5, %v3574_v5 }
 0x8c1   : > { %v1420_v7 = vshrl.u32 %v1418_v6, 16  ;;  %v1423_v9 = vshll.u32 %v1418_v6, 16 }
 0x8c3   : > { %v1422_v8 = vrot.slane %v1420_v7, 7 }
 0x8c5   : > { %v1425_v11 = vor.u32 %v1423_v9, %v1422_v8 }
 0x8c7   : > { %v1430_v27 = vsel %vm3578_vm8, 0, %v1425_v11  ;;  %v2895_v11 = vld [vmem:[#allocation10 + $0x80] sm:$0xff]  }
 0x8c8   : > { %v1434_v13 = vsel %vm3582_vm9, %v1430_v27, 0 }
 0x8c9   : > { %v1471_v14 = vshll.u32 %v1434_v13, 16  ;;  %2590 = vmatmul.mubr.bf16.vlgmr.msra.gmra.mrb[24].mxu1 %v1434_v13  ;;  %v1469_v15 = vshrl.u32 %v1434_v13, 16  ;;  %v1670_v26 = vrot.slane %v1434_v13, 1  ;;  %v2896_v13 = vld [vmem:[#allocation10 + $0x88] sm:$0xff]  }
 0x8ca   : > { %2629 = vmatprep.mubr.msk.bf16.mxu1 %vm3144_vm0, %v3143_v35  ;;  %2614 = vmatpush3.bf16.msra.mxu1 %v2881_v29 }
 0x8cb   : > { %v1473_v16 = vrot.slane %v1471_v14, 1  ;;  %2615 = vmatprep.subr.bf16.mxu1 %v3143_v35  ;;  %v2899_v14 = vld [vmem:[#allocation10 + $0xa0] sm:$0xff]  }
 0x8cd   : > { %v1474_v18 = vor.u32 %v1473_v16, %v1469_v15  ;;  %v2900_v15 = vld [vmem:[#allocation10 + $0xa8] sm:$0xff]   ;;  %v2901_v16 = vld [vmem:[#allocation10 + $0xb0] sm:$0xff]  }
 0x8ce   : > { %2616 = vmatpush3.bf16.msra.mxu1 %v2883_v31 }
 0x8cf   : > { %2570 = vmatmul.mubr.bf16.vlgmr.msra.gmra.mrb[12].mxu0 %v1474_v18  ;;  %2617 = vmatprep.subr.bf16.mxu1 %v3143_v35 }
 0x8d0   : > { %2594 = vmatpush3.bf16.msra.mxu0 %v2871_v17  ;;  %2609 = vmatprep.mubr.msk.bf16.mxu0 %vm3144_vm0, %v3143_v35  ;;  %v2902_v17 = vld [vmem:[#allocation10 + $0xb8] sm:$0xff]  }
 0x8d1   : > { %2595 = vmatprep.subr.bf16.mxu0 %v3143_v35 }
 0x8d2   : > { %2618 = vmatpush3.bf16.msra.mxu1 %v2885_v33 }
 0x8d3   : > { %2619 = vmatprep.subr.bf16.mxu1 %v3143_v35 }
 0x8d4   : > { %2596 = vmatpush3.bf16.msra.mxu0 %v2872_v19 }
 0x8d5   : > { %2597 = vmatprep.subr.bf16.mxu0 %v3143_v35 }
 0x8d6   : > { %2620 = vmatpush3.bf16.msra.mxu1 %v2887_v40 }
 0x8d7   : > { %2621 = vmatprep.subr.bf16.mxu1 %v3143_v35 }
 0x8d8   : > { %2598 = vmatpush3.bf16.msra.mxu0 %v2873_v20 }
 0x8d9   : > { %2599 = vmatprep.subr.bf16.mxu0 %v3143_v35 }
 0x8da   : > { %2622 = vmatpush3.bf16.msra.mxu1 %v2889_v42 }
 0x8db   : > { %2623 = vmatprep.subr.bf16.mxu1 %v3143_v35 }
 0x8dc   : > { %2600 = vmatpush3.bf16.msra.mxu0 %v2874_v21 }
 0x8dd   : > { %2601 = vmatprep.subr.bf16.mxu0 %v3143_v35 }
 0x8de   : > { %2624 = vmatpush3.bf16.msra.mxu1 %v2891_v45 }
 0x8df   : > { %2625 = vmatprep.subr.bf16.mxu1 %v3143_v35 }
 0x8e0   : > { %2602 = vmatpush3.bf16.msra.mxu0 %v2875_v22 }
 0x8e1   : > { %2603 = vmatprep.subr.bf16.mxu0 %v3143_v35 }
 0x8e2   : > { %2626 = vmatpush3.bf16.msra.mxu1 %v2893_v46 }
 0x8e3   : > { %2627 = vmatprep.subr.bf16.mxu1 %v3143_v35 }
 0x8e4   : > { %2604 = vmatpush3.bf16.msra.mxu0 %v2876_v23 }
 0x8e5   : > { %2605 = vmatprep.subr.bf16.mxu0 %v3143_v35 }
 0x8e6   : > { %2628 = vmatpush3.bf16.msra.mxu1 %v2894_v47 }
 0x8e7   : > { %2653 = vmatprep.subr.bf16.mxu1 %v3143_v35 }
 0x8e8   : > { %2606 = vmatpush3.bf16.msra.mxu0 %v2877_v24 }
 0x8e9   : > { %2607 = vmatprep.subr.bf16.mxu0 %v3143_v35 }
 0x8ec   : > { %2608 = vmatpush3.bf16.msra.mxu0 %v2878_v25 }
 0x8ed   : > { %2633 = vmatprep.subr.bf16.mxu0 %v3143_v35 }
 0x8ef   : > { %2610 = vmatmul.mubr.bf16.vlgmr.msra.gmra.mrb[16].mxu0 %v1670_v26 }
 0x8f0   : > { %2649 = vmatprep.mubr.msk.bf16.mxu0 %vm3144_vm0, %v3143_v35  ;;  %2634 = vmatpush3.bf16.msra.mxu0 %v2879_v28 }
 0x8f1   : > { %2635 = vmatprep.subr.bf16.mxu0 %v3143_v35 }
 0x8f4   : > { %2636 = vmatpush3.bf16.msra.mxu0 %v2880_v30  ;;  %v2402_v30 = vld [vmem:[%s3742_s10] ss:$0 sm:$0xff]  ;;  %s3745_s10 = sld [smem:[#allocation22_spill]] }
 0x8f5   : > { %2637 = vmatprep.subr.bf16.mxu0 %v3143_v35 }
 0x8f8   : > { %2638 = vmatpush3.bf16.msra.mxu0 %v2882_v32 }
 0x8f9   : > { %2639 = vmatprep.subr.bf16.mxu0 %v3143_v35 }
 0x8fa   : > { %s3652_s0 = scalar_lea.hbm %s3745_s10, %s2406_s19 }
 0x8fc   : > { %2640 = vmatpush3.bf16.msra.mxu0 %v2884_v34 }
 0x8fd   : > { %2641 = vmatprep.subr.bf16.mxu0 %v3143_v35 }
 0x900   : > { %2642 = vmatpush3.bf16.msra.mxu0 %v2886_v38 }
 0x901   : > { %2643 = vmatprep.subr.bf16.mxu0 %v3143_v35 }
 0x904   : > { %2644 = vmatpush3.bf16.msra.mxu0 %v2888_v41 }
 0x905   : > { %2645 = vmatprep.subr.bf16.mxu0 %v3143_v35 }
 0x908   : > { %2646 = vmatpush3.bf16.msra.mxu0 %v2890_v44 }
 0x909   : > { %2647 = vmatprep.subr.bf16.mxu0 %v3143_v35 }
 0x90c   : > { %2648 = vmatpush3.bf16.msra.mxu0 %v2892_v37 }
 0x99c   : > { %v1646_v39 = vpop.f32.mrb[24].mxu1 }
 0x99d   : > { %v2591_v36 = vpop.f32.mrb[25].mxu1 }
 0x99e   : > { %v1649_v48 = vpop.f32.mrb[26].mxu1 }
 0x99f   : > { %v2592_v49 = vpop.f32.mrb[27].mxu1  ;;  %v2404_v48 = vld [vmem:[%s3744_s11] ss:$0 sm:$0xff] }
 0x9a2   : > { %v1558_v50 = vpop.f32.mrb[12].mxu0 }
 0x9a3   : > { %v1647_v51 = vadd.f32 %v1646_v39, %v1558_v50  ;;  %v2571_v52 = vpop.f32.mrb[13].mxu0  ;;  %v2403_v39 = vld [vmem:[%s3743_s12] ss:$0 sm:$0xff]  ;;  %s3063_s12 = scalar_lea.vmem %s3062_s30, 256 }
 0x9a4   : > { %v1561_v53 = vpop.f32.mrb[14].mxu0  ;;  %p3065_p1 = scmp.lt.s32.totalorder %s3063_s12, %s3057_s13 }
 0x9a5   : > { %v2572_v54 = vpop.f32.mrb[15].mxu0 }
 0x9a6   : > { %p3066_p11 = por %p3065_p1, %p3064_p10 }
 0x9a8   : > { %p3067_p12 = pnand %p3066_p11, %p3060_p5 }
 0x9c2   : > { %v1754_v55 = vpop.f32.mrb[16].mxu0 }
 0x9c3   : > { %v1760_v57 = vadd.f32 %v1754_v55, %v1647_v51  ;;  %v2611_v58 = vpop.f32.mrb[17].mxu0 }
 0x9c4   : > { %v1757_v59 = vpop.f32.mrb[18].mxu0 }
 0x9c5   : > { %v1768_v60 = vadd.f32 %v2377_v56, %v1760_v57  ;;  %v2612_v61 = vpop.f32.mrb[19].mxu0 }
 0x9c7   : > { %v1769_v62 = vmax.f32 %v1768_v60, 0.0 }
 0x9c9   : > { %v1770_v63 = vpack.c.bf16 %v1769_v62, %v1769_v62 }
 0x9cb   : > { %v1772_v0 = vshrl.u32 %v1770_v63, 16  ;;  %v1775_v2 = vshll.u32 %v1770_v63, 16 }
 0x9cd   : > { %v1774_v1 = vrot.slane %v1772_v0, 7 }
 0x9cf   : > { %v1777_v3 = vor.u32 %v1775_v2, %v1774_v1 }
 0x9d1   : > { %v1779_v4 = vsel %vm3578_vm8, 0, %v1777_v3 }
 0x9d2   : > { %v1780_v6 = vsel %vm3582_vm9, %v1779_v4, 0 }
 0x9d3   : > { %v1817_v7 = vshll.u32 %v1780_v6, 16  ;;  %2650 = vmatmul.mubr.bf16.vlgmr.msra.gmra.mrb[20].mxu0 %v1780_v6  ;;  %v1815_v8 = vshrl.u32 %v1780_v6, 16  ;;  %v2016_v18 = vrot.slane %v1780_v6, 1 }
 0x9d5   : > { %v1819_v9 = vrot.slane %v1817_v7, 1 }
 0x9d7   : > { %v1820_v27 = vor.u32 %v1819_v9, %v1815_v8 }
 0x9d9   : > { %2630 = vmatmul.mubr.bf16.vlgmr.msra.gmra.mrb[28].mxu1 %v1820_v27 }
 0x9da   : > { %2654 = vmatpush3.bf16.msra.mxu1 %v2895_v11  ;;  %2669 = vmatprep.mubr.msk.bf16.mxu1 %vm3144_vm0, %v3143_v35 }
 0x9db   : > { %2655 = vmatprep.subr.bf16.mxu1 %v3143_v35 }
 0x9de   : > { %2656 = vmatpush3.bf16.msra.mxu1 %v2896_v13 }
 0x9df   : > { %2657 = vmatprep.subr.bf16.mxu1 %v3143_v35 }
 0x9e2   : > { %2658 = vmatpush3.bf16.msra.mxu1 %v2897_v10 }
 0x9e3   : > { %2659 = vmatprep.subr.bf16.mxu1 %v3143_v35 }
 0x9e6   : > { %2660 = vmatpush3.bf16.msra.mxu1 %v2898_v12 }
 0x9e7   : > { %2661 = vmatprep.subr.bf16.mxu1 %v3143_v35 }
 0x9ea   : > { %2662 = vmatpush3.bf16.msra.mxu1 %v2899_v14 }
 0x9eb   : > { %2663 = vmatprep.subr.bf16.mxu1 %v3143_v35 }
 0x9ee   : > { %2664 = vmatpush3.bf16.msra.mxu1 %v2900_v15 }
 0x9ef   : > { %2665 = vmatprep.subr.bf16.mxu1 %v3143_v35 }
 0x9f2   : > { %2666 = vmatpush3.bf16.msra.mxu1 %v2901_v16 }
 0x9f3   : > { %2667 = vmatprep.subr.bf16.mxu1 %v3143_v35 }
 0x9f6   : > { %2668 = vmatpush3.bf16.msra.mxu1 %v2902_v17 }
 0x9f9   : > { %2670 = vmatmul.mubr.bf16.vlgmr.msra.gmra.mrb[32].mxu1 %v2016_v18 }
 0xaa6   : > { %v1992_v19 = vpop.f32.mrb[20].mxu0 }
 0xaa7   : > { %v2651_v20 = vpop.f32.mrb[21].mxu0 }
 0xaa8   : > { %v1995_v21 = vpop.f32.mrb[22].mxu0 }
 0xaa9   : > { %v2652_v22 = vpop.f32.mrb[23].mxu0 }
 0xaac   : > { %v1904_v23 = vpop.f32.mrb[28].mxu1 }
 0xaad   : > { %v1993_v24 = vadd.f32 %v1992_v19, %v1904_v23  ;;  %v2631_v25 = vpop.f32.mrb[29].mxu1 }
 0xaae   : > { %v1907_v26 = vpop.f32.mrb[30].mxu1 }
 0xaaf   : > { %v2632_v28 = vpop.f32.mrb[31].mxu1 }
 0xacc   : > { %v2100_v29 = vpop.f32.mrb[32].mxu1 }
 0xacd   : > { %v2106_v31 = vadd.f32 %v2100_v29, %v1993_v24  ;;  %v2671_v32 = vpop.f32.mrb[33].mxu1 }
 0xace   : > { %v2103_v35 = vpop.f32.mrb[34].mxu1 }
 0xacf   : > { %v2672_v33 = vpop.f32.mrb[35].mxu1  ;;  %v2114_v34 = vadd.f32 %v2402_v30, %v2106_v31 }
 0xad1   : > { %2117 = vadd.xlane.f32.xlu0 %v2114_v34 }
 0xb5e   : > { %v2118_v38 = vpop.xlane.xlu0 %2117 }
 0xb5f   : > { %v2119_v40 = vmul.f32 0.03125, %v2118_v38 }
 0xb61   : > { %v2120_v41 = vsub.f32 %v2114_v34, %v2119_v40 }
 0xb63   : > { %v2121_v42 = vmul.f32 %v3548_v43, %v2120_v41 }
 0xb65   : > { %v2122_v44 = vmul.f32 %v2121_v42, %v2121_v42 }
 0xb67   : > { %2123 = vadd.xlane.f32.xlu1 %v2122_v44 }
 0xbf4   : > { %v2124_v45 = vpop.xlane.xlu1 %2123 }
 0xbf5   : > { %v2125_v37 = vmul.f32 0.03125, %v2124_v45 }
 0xbf7   : > { %v2126_v46 = vadd.f32 1e-05, %v2125_v37 }
 0xbf9   : > { %2913 = vrsqrt.f32 %v2126_v46 }
 0xc03   : > { %v2914_v47 = vpop.eup %2913 }
 0xc04   : > { %v2128_v36 = vmul.f32 %v2914_v47, %v2121_v42 }
 0xc06   : > { %v2135_v49 = vmul.f32 %v2403_v39, %v2128_v36 }
 0xc08   : > { %v2142_v43 = vadd.f32 %v2404_v48, %v2135_v49 }
 0xc0a   : > { %v2143_v50 = vadd.f32 %v2142_v43, %v3574_v5 }
 0xc0c   : > { %2144 = vst [vmem:[%s513_s21] sm:$0xff] %v2143_v50 }
 0xc0d   : > { %3070 = shalt.err (!%p3067_p12)
}
 0xc0e   : > { %s3071_s1 = scalar_lea.hbm %s3652_s0, 128  ;;  %s3075_s11 = scalar_lea.hbm %s3745_s10, 256 }
 0xc0f   : > { %p3072_p13 = scmp.ne.s32.totalorder %s3652_s0, %s3071_s1  ;;  %p3076_p9 = scmp.lt.u32.totalorder %s3652_s0, %s3745_s10 }
 0xc10   : > { %p3077_p4 = scmp.lt.u32.totalorder %s3075_s11, %s3071_s1  ;;  %p3079_p6 = scmp.lt.u32.totalorder %s3071_s1, %s3652_s0 }
 0xc11   : > { %p3073_p3 = pnand %p3072_p13, %p3746_p0 }
 0xc12   : > { %p3078_p8 = por %p3077_p4, %p3076_p9 }
 0xc13   : > { %p3074_p7 = pneg %p3073_p3 }
 0xc14   : > { %p3080_p2 = por %p3079_p6, %p3078_p8 }
 0xc16   : > { %p3081_p5 = pnand %p3080_p2, %p3074_p7 }
 0xc18   : > { %3084 = shalt.err (!%p3081_p5)
}
 0xc19   : > { %2691 = dma.vmem_to_hbm [thread:$0]  (%p3746_p0), %s3654_s29, 128, %s3652_s0, %s2146_s18  }
 0xc1a PF: > { %s2171_s20 = sand.u32 1, %s3119_s25   ;;  %p3747_p10 = scmp.ne.s32.totalorder %s3729_s17, 0 }
 0xc1b   : > { %p3748_p1 = scmp.ge.s32.totalorder %s3131_s28, 2  ;;  %s2172_s15 = scalar_lea.sflag [#allocation4], %s2171_s20 }
 0xc1d   : > { %p2711_p11 = pnand %p3748_p1, %p3747_p10 }
 0xc1f   : > { %3114 = dma.done.wait (!%p2711_p11), %s2172_s15, 128  }
 0xc20   : > { %3116 = vsyncadd (!%p2711_p11), %s2172_s15, 4294967168  ;;  %p28_p12 = scmp.ge.s32.totalorder %s3361_s16, 4   ;;  %s3749_s25 = smov %s3123_s26 }
 0xc21   : > { %s3750_s26 = smov %s3127_s27  ;;  %s3751_s27 = smov %s3372_s24 }
 0xc22   : > { %s3752_s28 = smov %s3361_s16  ;;  %30 = sbr.rel (!%p28_p12) target bundleno = 15 (0xf), region = 137 }
 0xc29   :  { %2177 = vsyncpa [#allocation3], 1 }
 0xc2a   :  { %2179 = vsyncpa [#allocation3 + $0x1], 1 }
 0xc2b   :  { %2180 = vsyncpa [#allocation6], 1 }
 0xc2c   :  { %2181 = vsyncpa [#allocation9], 1 }
 0xc2d   :  { %2182 = vsyncpa [#allocation4], 1 }
 0xc2e   :  { %2184 = vsyncpa [#allocation4 + $0x1], 1 }

</bundles_post_ra>
